<compile_context>
chip_gen: v5e
topology: v5e:2x2
jax: 0.10.0
libtpu: 0.0.40
codegen_flags: <defaults>
</compile_context>

<pallas_src>
import functools

import numpy as np
import jax
import jax.numpy as jnp
from jax import lax
from jax.experimental import pallas as pl
from jax.experimental.pallas import tpu as pltpu


def _rup(n, m):
    return ((n + m - 1) // m) * m


# --------------------------- in-kernel 3x3 conv ----------------------------- #
def _conv3x3_acc(pad_ref, w_ref, *, Mi, Wo, P, Cpad):
    """3x3 / stride-1 conv from a zero-padded (Mi + 2P, Cpad) f32 VMEM scratch.

    Rows [P, P+Mi) hold the activation (flattened (h, w)); halo rows are zero.
    Each tap is a statically shifted row window + column-validity mask, fed to
    one MXU matmul; accumulation in f32.
    """
    col = lax.broadcasted_iota(jnp.int32, (Mi, 1), 0) % Wo
    acc = jnp.zeros((Mi, Cpad), jnp.float32)
    for k in range(9):
        dy, dx = k // 3 - 1, k % 3 - 1
        patch = pad_ref[pl.ds(P + dy * Wo + dx, Mi), :].astype(jnp.bfloat16)
        if dx != 0:  # horizontal wrap across row boundaries -> mask out
            valid = (col + dx >= 0) & (col + dx < Wo)
            patch = jnp.where(valid, patch, jnp.zeros_like(patch))
        acc = acc + jnp.dot(patch, w_ref[k],
                            preferred_element_type=jnp.float32)
    return acc


# ------------------------------ Pallas kernels ------------------------------ #
def _resblock_kernel_s1(x_ref, w1_ref, b1_ref, w2_ref, b2_ref, o_ref,
                        pad_ref, *, Mi, Wo, P, Cpad):
    """stride == 1: in-kernel conv1 + conv2, identity skip (exact f32 add)."""
    pad_ref[...] = jnp.zeros((Mi + 2 * P, Cpad), jnp.float32)
    x32 = x_ref[0]                                           # (Mi, Cpad) f32
    pad_ref[pl.ds(P, Mi), :] = x32
    y1 = jnp.maximum(
        _conv3x3_acc(pad_ref, w1_ref, Mi=Mi, Wo=Wo, P=P, Cpad=Cpad)
        + b1_ref[...], 0.0)
    pad_ref[pl.ds(P, Mi), :] = y1                            # reuse scratch
    y2 = (_conv3x3_acc(pad_ref, w2_ref, Mi=Mi, Wo=Wo, P=P, Cpad=Cpad)
          + b2_ref[...])
    o_ref[0] = jnp.maximum(y2 + x32, 0.0)


def _resblock_kernel_ds(xt_ref, w1_ref, b1_ref, w2_ref, b2_ref,
                        xs_ref, wd_ref, bd_ref, o_ref,
                        pad_ref, *, Mi, Wo, P, Cpad):
    """stride != 1: fused-K conv1 matmul, in-kernel conv2, 1x1-conv skip."""
    pad_ref[...] = jnp.zeros((Mi + 2 * P, Cpad), jnp.float32)
    # conv1 + BN1 + ReLU: single matmul with K = 9*Cin
    y1 = jnp.maximum(
        jnp.dot(xt_ref[0], w1_ref[...], preferred_element_type=jnp.float32)
        + b1_ref[...], 0.0)
    pad_ref[pl.ds(P, Mi), :] = y1
    # conv2 + BN2
    y2 = (_conv3x3_acc(pad_ref, w2_ref, Mi=Mi, Wo=Wo, P=P, Cpad=Cpad)
          + b2_ref[...])
    # downsample skip: 1x1 strided conv + BN (stride applied in wrapper gather)
    skip = (jnp.dot(xs_ref[0], wd_ref[...], preferred_element_type=jnp.float32)
            + bd_ref[...])
    o_ref[0] = jnp.maximum(y2 + skip, 0.0)


# --------------------------------- wrapper ---------------------------------- #
def _fold_bn(bn, eps=1e-5):
    g, b, m, v = bn
    s = g / jnp.sqrt(v + eps)
    return s, b - m * s


def resblock_pallas(x_nchw, params, stride):
    N, Cin, H, W = x_nchw.shape
    Cout = params["w1"].shape[-1]
    Ho = (H + 2 - 3) // stride + 1
    Wo = (W + 2 - 3) // stride + 1
    Mi = Ho * Wo                          # rows per image (one grid tile)
    Cpad = _rup(Cout, 128)                # lane-dense output channels
    P = _rup(Wo + 1, 8)                   # halo rows (8-aligned scratch writes)

    x = jnp.transpose(x_nchw, (0, 2, 3, 1)).astype(jnp.float32)      # NHWC

    # eval-mode BN folded into weights (scale) + bias
    s1, b1 = _fold_bn(params["bn1"])
    s2, b2 = _fold_bn(params["bn2"])
    b1p = jnp.pad(b1, (0, Cpad - Cout)).reshape(1, Cpad)
    b2p = jnp.pad(b2, (0, Cpad - Cout)).reshape(1, Cpad)
    w1s = params["w1"] * s1                                   # (3,3,Cin,Cout)
    w2p = jnp.pad((params["w2"] * s2).reshape(9, Cout, Cout),
                  ((0, 0), (0, Cpad - Cout), (0, Cpad - Cout))
                  ).astype(jnp.bfloat16)                      # (9,Cpad,Cpad)

    if stride == 1:
        assert Cin == Cout, "identity skip needs in_channels == out_channels"
        # raw input slab per image (f32 so the residual add is exact)
        x3 = jnp.pad(x.reshape(N, Mi, Cin),
                     ((0, 0), (0, 0), (0, Cpad - Cin)))
        w1k = jnp.pad(w1s.reshape(9, Cin, Cout),
                      ((0, 0), (0, Cpad - Cin), (0, Cpad - Cout))
                      ).astype(jnp.bfloat16)

        kernel = functools.partial(_resblock_kernel_s1,
                                   Mi=Mi, Wo=Wo, P=P, Cpad=Cpad)
        inputs = (x3, w1k, b1p, w2p, b2p)
        in_specs = [
            pl.BlockSpec((1, Mi, Cpad), lambda n: (n, 0, 0)),
            pl.BlockSpec((9, Cpad, Cpad), lambda n: (0, 0, 0)),
            pl.BlockSpec((1, Cpad), lambda n: (0, 0)),
            pl.BlockSpec((9, Cpad, Cpad), lambda n: (0, 0, 0)),
            pl.BlockSpec((1, Cpad), lambda n: (0, 0)),
        ]
    else:
        # conv1 im2col fused along K (pure gather / glue in the wrapper)
        K1 = 9 * Cin
        K1p = _rup(K1, 128)
        xp = jnp.pad(x, ((0, 0), (1, 1), (1, 1), (0, 0)))
        taps = []
        for kh in range(3):
            for kw in range(3):
                taps.append(xp[:, kh:kh + stride * (Ho - 1) + 1:stride,
                                  kw:kw + stride * (Wo - 1) + 1:stride, :])
        x_taps = jnp.concatenate(taps, axis=-1).reshape(N, Mi, K1)
        x_taps = jnp.pad(x_taps, ((0, 0), (0, 0), (0, K1p - K1))
                         ).astype(jnp.bfloat16)
        w1f = jnp.pad(w1s.reshape(K1, Cout),
                      ((0, K1p - K1), (0, Cpad - Cout))).astype(jnp.bfloat16)

        # downsample skip: 1x1 strided conv + BN
        Kd = _rup(Cin, 128)
        sd, bd = _fold_bn(params["bnd"])
        wdp = jnp.pad(params["wd"] * sd,
                      ((0, Kd - Cin), (0, Cpad - Cout))).astype(jnp.bfloat16)
        bdp = jnp.pad(bd, (0, Cpad - Cout)).reshape(1, Cpad)
        x_skip = jnp.pad(x[:, ::stride, ::stride, :].reshape(N, Mi, Cin),
                         ((0, 0), (0, 0), (0, Kd - Cin))).astype(jnp.bfloat16)

        kernel = functools.partial(_resblock_kernel_ds,
                                   Mi=Mi, Wo=Wo, P=P, Cpad=Cpad)
        inputs = (x_taps, w1f, b1p, w2p, b2p, x_skip, wdp, bdp)
        in_specs = [
            pl.BlockSpec((1, Mi, K1p), lambda n: (n, 0, 0)),
            pl.BlockSpec((K1p, Cpad), lambda n: (0, 0)),
            pl.BlockSpec((1, Cpad), lambda n: (0, 0)),
            pl.BlockSpec((9, Cpad, Cpad), lambda n: (0, 0, 0)),
            pl.BlockSpec((1, Cpad), lambda n: (0, 0)),
            pl.BlockSpec((1, Mi, Kd), lambda n: (n, 0, 0)),
            pl.BlockSpec((Kd, Cpad), lambda n: (0, 0)),
            pl.BlockSpec((1, Cpad), lambda n: (0, 0)),
        ]

    out3 = pl.pallas_call(
        kernel,
        out_shape=jax.ShapeDtypeStruct((N, Mi, Cpad), jnp.float32),
        grid_spec=pltpu.PrefetchScalarGridSpec(
            num_scalar_prefetch=0,
            grid=(N,),
            in_specs=in_specs,
            out_specs=pl.BlockSpec((1, Mi, Cpad), lambda n: (n, 0, 0)),
            scratch_shapes=[pltpu.VMEM((Mi + 2 * P, Cpad), jnp.float32)],
        ),
        compiler_params=pltpu.CompilerParams(
            dimension_semantics=("parallel",)),
    )(*inputs)

    out = out3[:, :, :Cout].reshape(N, Ho, Wo, Cout)
    return jnp.transpose(out, (0, 3, 1, 2))                  # back to NCHW


# ---------------- precision-mirrored pure-JAX reference (validation) -------- #
def resblock_ref(x_nchw, p, stride):
    """Eval-mode BN folded; matmul operands rounded to bf16 (like the kernel),
    accumulation and elementwise math in f32."""
    q = lambda a: a.astype(jnp.bfloat16).astype(jnp.float32)
    dn = ("NHWC", "HWIO", "NHWC")
    hi = lax.Precision.HIGHEST

    s1, b1 = _fold_bn(p["bn1"])
    s2, b2 = _fold_bn(p["bn2"])

    x = jnp.transpose(x_nchw, (0, 2, 3, 1)).astype(jnp.float32)
    y = lax.conv_general_dilated(q(x), q(p["w1"] * s1), (stride, stride),
                                 ((1, 1), (1, 1)), dimension_numbers=dn,
                                 precision=hi) + b1
    y = jnp.maximum(y, 0.0)
    y = lax.conv_general_dilated(q(y), q(p["w2"] * s2), (1, 1),
                                 ((1, 1), (1, 1)), dimension_numbers=dn,
                                 precision=hi) + b2
    if stride == 1:
        skip = x
    else:
        sd, bd = _fold_bn(p["bnd"])
        wd = (p["wd"] * sd)[None, None]                       # (1,1,Cin,Cout)
        skip = lax.conv_general_dilated(q(x), q(wd), (stride, stride),
                                        ((0, 0), (0, 0)), dimension_numbers=dn,
                                        precision=hi) + bd
    out = jnp.maximum(y + skip, 0.0)
    return jnp.transpose(out, (0, 3, 1, 2))


# ---------------------- deterministic parameter init ------------------------ #
def _conv_init(key, kh, kw, cin, cout):
    fan_in = cin * kh * kw
    return jax.random.normal(key, (kh, kw, cin, cout),
                             jnp.float32) * np.sqrt(2.0 / fan_in)


def _bn_init(keys, c):
    g = 1.0 + 0.1 * jax.random.normal(keys[0], (c,), jnp.float32)
    b = 0.1 * jax.random.normal(keys[1], (c,), jnp.float32)
    m = 0.1 * jax.random.normal(keys[2], (c,), jnp.float32)
    v = jax.random.uniform(keys[3], (c,), jnp.float32, minval=0.5, maxval=1.5)
    return (g, b, m, v)


def init_params(key, cin, cout, stride):
    ks = jax.random.split(key, 16)
    p = {
        "w1": _conv_init(ks[0], 3, 3, cin, cout),
        "bn1": _bn_init(ks[1:5], cout),
        "w2": _conv_init(ks[5], 3, 3, cout, cout),
        "bn2": _bn_init(ks[6:10], cout),
    }
    if stride != 1:
        p["wd"] = _conv_init(ks[10], 1, 1, cin, cout)[0, 0]    # (cin, cout)
        p["bnd"] = _bn_init(ks[11:15], cout)
    return p


# ----------------------------------- main ----------------------------------- #
if __name__ == "__main__":
    key = jax.random.PRNGKey(0)
    kx1, kx2, kp1, kp2 = jax.random.split(key, 4)

    # Case 1: stride=2, channel expansion -> downsample (1x1 conv + BN) skip
    N, Cin, H, W, Cout = 2, 4, 16, 16, 8
    x1 = jax.random.normal(kx1, (N, Cin, H, W), jnp.float32)
    p1 = init_params(kp1, Cin, Cout, stride=2)
    out1 = resblock_pallas(x1, p1, stride=2)
    ref1 = resblock_ref(x1, p1, stride=2)
    np.testing.assert_allclose(np.asarray(out1), np.asarray(ref1),
                               rtol=2e-3, atol=2e-3)

    # Case 2: stride=1, identity skip (in_channels == out_channels)
    x2 = jax.random.normal(kx2, (2, 4, 8, 8), jnp.float32)
    p2 = init_params(kp2, 4, 4, stride=1)
    out2 = resblock_pallas(x2, p2, stride=1)
    ref2 = resblock_ref(x2, p2, stride=1)
    np.testing.assert_allclose(np.asarray(out2), np.asarray(ref2),
                               rtol=2e-3, atol=2e-3)

    jax.block_until_ready((out1, out2))
    print("KERNEL_OK")
</pallas_src>

<mosaic_0001>
module attributes {stable_mosaic.version = 11 : i64} {
  func.func @_resblock_kernel_ds(%arg0: i32, %arg1: memref<1x64x128xbf16, #tpu.memory_space<vmem>>, %arg2: memref<128x128xbf16, #tpu.memory_space<vmem>>, %arg3: memref<1x128xf32, #tpu.memory_space<vmem>>, %arg4: memref<9x128x128xbf16, #tpu.memory_space<vmem>>, %arg5: memref<1x128xf32, #tpu.memory_space<vmem>>, %arg6: memref<1x64x128xbf16, #tpu.memory_space<vmem>>, %arg7: memref<128x128xbf16, #tpu.memory_space<vmem>>, %arg8: memref<1x128xf32, #tpu.memory_space<vmem>>, %arg9: memref<1x64x128xf32, #tpu.memory_space<vmem>>, %arg10: memref<96x128xf32, #tpu.memory_space<vmem>>) attributes {dimension_semantics = [#tpu.dimension_semantics<parallel>], iteration_bounds = array<i64: 2>, scalar_prefetch = 0 : i64, scratch_operands = 1 : i64, tpu.core_type = #tpu.core_type<tc>, window_params = [{transform_indices = @transform_0, window_bounds = array<i64: 1, 64, 128>}, {pipeline_mode = #tpu.pipeline_mode<synchronous>, transform_indices = @transform_1, window_bounds = array<i64: 128, 128>}, {pipeline_mode = #tpu.pipeline_mode<synchronous>, transform_indices = @transform_2, window_bounds = array<i64: 1, 128>}, {pipeline_mode = #tpu.pipeline_mode<synchronous>, transform_indices = @transform_3, window_bounds = array<i64: 9, 128, 128>}, {pipeline_mode = #tpu.pipeline_mode<synchronous>, transform_indices = @transform_4, window_bounds = array<i64: 1, 128>}, {transform_indices = @transform_5, window_bounds = array<i64: 1, 64, 128>}, {pipeline_mode = #tpu.pipeline_mode<synchronous>, transform_indices = @transform_6, window_bounds = array<i64: 128, 128>}, {pipeline_mode = #tpu.pipeline_mode<synchronous>, transform_indices = @transform_7, window_bounds = array<i64: 1, 128>}, {transform_indices = @transform_8, window_bounds = array<i64: 1, 64, 128>}]} {
    %cst = arith.constant 0.000000e+00 : f32
    %0 = vector.broadcast %cst : f32 to vector<96x128xf32>
    %c0 = arith.constant 0 : index
    %c0_0 = arith.constant 0 : index
    %1 = vector.load %arg10[%c0, %c0_0] : memref<96x128xf32, #tpu.memory_space<vmem>>, vector<96x128xf32>
    tpu.vector_store %arg10[%c0, %c0_0], %0 {strides = array<i32>} : memref<96x128xf32, #tpu.memory_space<vmem>>, vector<96x128xf32>,
    %c0_1 = arith.constant 0 : index
    %c0_2 = arith.constant 0 : index
    %c0_3 = arith.constant 0 : index
    %2 = vector.load %arg1[%c0_1, %c0_2, %c0_3] : memref<1x64x128xbf16, #tpu.memory_space<vmem>>, vector<1x64x128xbf16>
    %3 = vector.shape_cast %2 : vector<1x64x128xbf16> to vector<64x128xbf16>
    %c0_4 = arith.constant 0 : index
    %c0_5 = arith.constant 0 : index
    %4 = vector.load %arg2[%c0_4, %c0_5] : memref<128x128xbf16, #tpu.memory_space<vmem>>, vector<128x128xbf16>
    %cst_6 = arith.constant dense<0.000000e+00> : vector<64x128xf32>
    %5 = tpu.matmul %3, %4, %cst_6 {dimension_numbers = #tpu.dot_dimension_numbers<[1], [0], [0], [1], [0, 0, 1, 1], [], []>} : vector<64x128xbf16>, vector<128x128xbf16>, vector<64x128xf32> -> vector<64x128xf32>
    %c0_7 = arith.constant 0 : index
    %c0_8 = arith.constant 0 : index
    %6 = vector.load %arg3[%c0_7, %c0_8] : memref<1x128xf32, #tpu.memory_space<vmem>>, vector<1x128xf32>
    %7 = vector.broadcast %6 : vector<1x128xf32> to vector<64x128xf32>
    %8 = arith.addf %5, %7 : vector<64x128xf32>
    %cst_9 = arith.constant 0.000000e+00 : f32
    %9 = vector.broadcast %cst_9 : f32 to vector<64x128xf32>
    %10 = arith.maximumf %8, %9 : vector<64x128xf32>
    %c16 = arith.constant 16 : index
    %c0_10 = arith.constant 0 : index
    %11 = vector.load %arg10[%c16, %c0_10] : memref<96x128xf32, #tpu.memory_space<vmem>>, vector<64x128xf32>
    tpu.vector_store %arg10[%c16, %c0_10], %10 {strides = array<i32>} : memref<96x128xf32, #tpu.memory_space<vmem>>, vector<64x128xf32>,
    %12 = tpu.iota {dimensions = array<i32: 0>} : vector<64x1xi32>
    %c8_i32 = arith.constant 8 : i32
    %c0_i32 = arith.constant 0 : i32
    %13 = arith.cmpi eq, %c8_i32, %c0_i32 : i32
    %c1_i32 = arith.constant 1 : i32
    %14 = arith.select %13, %c1_i32, %c8_i32 : i32
    %15 = vector.broadcast %14 : i32 to vector<64x1xi32>
    %16 = arith.remsi %12, %15 : vector<64x1xi32>
    %c0_i32_11 = arith.constant 0 : i32
    %17 = vector.broadcast %c0_i32_11 : i32 to vector<64x1xi32>
    %18 = arith.cmpi ne, %16, %17 : vector<64x1xi32>
    %c0_i32_12 = arith.constant 0 : i32
    %19 = vector.broadcast %c0_i32_12 : i32 to vector<64x1xi32>
    %20 = arith.cmpi slt, %16, %19 : vector<64x1xi32>
    %c0_i32_13 = arith.constant 0 : i32
    %21 = arith.cmpi slt, %14, %c0_i32_13 : i32
    %22 = vector.broadcast %21 : i1 to vector<64x1xi1>
    %23 = vector.broadcast %22 : vector<64x1xi1> to vector<64x1xi1>
    %24 = arith.xori %20, %23 : vector<64x1xi1>
    %25 = arith.andi %24, %18 : vector<64x1xi1>
    %26 = vector.broadcast %14 : i32 to vector<64x1xi32>
    %27 = arith.addi %16, %26 : vector<64x1xi32>
    %28 = arith.select %25, %27, %16 : vector<64x1xi1>, vector<64x1xi32>
    %cst_14 = arith.constant 0.000000e+00 : f32
    %29 = vector.broadcast %cst_14 : f32 to vector<64x128xf32>
    %c7 = arith.constant 7 : index
    %c0_15 = arith.constant 0 : index
    %30 = vector.load %arg10[%c7, %c0_15] : memref<96x128xf32, #tpu.memory_space<vmem>>, vector<64x128xf32>
    %31 = arith.truncf %30 : vector<64x128xf32> to vector<64x128xbf16>
    %c-1_i32 = arith.constant -1 : i32
    %32 = vector.broadcast %c-1_i32 : i32 to vector<64x1xi32>
    %33 = arith.addi %28, %32 : vector<64x1xi32>
    %c0_i32_16 = arith.constant 0 : i32
    %34 = vector.broadcast %c0_i32_16 : i32 to vector<64x1xi32>
    %35 = arith.cmpi sge, %33, %34 : vector<64x1xi32>
    %c-1_i32_17 = arith.constant -1 : i32
    %36 = vector.broadcast %c-1_i32_17 : i32 to vector<64x1xi32>
    %37 = arith.addi %28, %36 : vector<64x1xi32>
    %c8_i32_18 = arith.constant 8 : i32
    %38 = vector.broadcast %c8_i32_18 : i32 to vector<64x1xi32>
    %39 = arith.cmpi slt, %37, %38 : vector<64x1xi32>
    %40 = arith.andi %35, %39 : vector<64x1xi1>
    %cst_19 = arith.constant 0.000000e+00 : bf16
    %41 = vector.broadcast %cst_19 : bf16 to vector<64x128xbf16>
    %42 = vector.shape_cast %40 : vector<64x1xi1> to vector<64x1xi1>
    %43 = vector.broadcast %42 : vector<64x1xi1> to vector<64x128xi1>
    %44 = arith.select %43, %31, %41 : vector<64x128xi1>, vector<64x128xbf16>
    %c0_20 = arith.constant 0 : index
    %c0_21 = arith.constant 0 : index
    %c0_22 = arith.constant 0 : index
    %45 = vector.load %arg4[%c0_20, %c0_21, %c0_22] : memref<9x128x128xbf16, #tpu.memory_space<vmem>>, vector<1x128x128xbf16>
    %46 = vector.shape_cast %45 : vector<1x128x128xbf16> to vector<128x128xbf16>
    %cst_23 = arith.constant dense<0.000000e+00> : vector<64x128xf32>
    %47 = tpu.matmul %44, %46, %cst_23 {dimension_numbers = #tpu.dot_dimension_numbers<[1], [0], [0], [1], [0, 0, 1, 1], [], []>} : vector<64x128xbf16>, vector<128x128xbf16>, vector<64x128xf32> -> vector<64x128xf32>
    %48 = arith.addf %29, %47 : vector<64x128xf32>
    %c8 = arith.constant 8 : index
    %c0_24 = arith.constant 0 : index
    %49 = vector.load %arg10[%c8, %c0_24] : memref<96x128xf32, #tpu.memory_space<vmem>>, vector<64x128xf32>
    %50 = arith.truncf %49 : vector<64x128xf32> to vector<64x128xbf16>
    %c1 = arith.constant 1 : index
    %c0_25 = arith.constant 0 : index
    %c0_26 = arith.constant 0 : index
    %51 = vector.load %arg4[%c1, %c0_25, %c0_26] : memref<9x128x128xbf16, #tpu.memory_space<vmem>>, vector<1x128x128xbf16>
    %52 = vector.shape_cast %51 : vector<1x128x128xbf16> to vector<128x128xbf16>
    %cst_27 = arith.constant dense<0.000000e+00> : vector<64x128xf32>
    %53 = tpu.matmul %50, %52, %cst_27 {dimension_numbers = #tpu.dot_dimension_numbers<[1], [0], [0], [1], [0, 0, 1, 1], [], []>} : vector<64x128xbf16>, vector<128x128xbf16>, vector<64x128xf32> -> vector<64x128xf32>
    %54 = arith.addf %48, %53 : vector<64x128xf32>
    %c9 = arith.constant 9 : index
    %c0_28 = arith.constant 0 : index
    %55 = vector.load %arg10[%c9, %c0_28] : memref<96x128xf32, #tpu.memory_space<vmem>>, vector<64x128xf32>
    %56 = arith.truncf %55 : vector<64x128xf32> to vector<64x128xbf16>
    %c1_i32_29 = arith.constant 1 : i32
    %57 = vector.broadcast %c1_i32_29 : i32 to vector<64x1xi32>
    %58 = arith.addi %28, %57 : vector<64x1xi32>
    %c0_i32_30 = arith.constant 0 : i32
    %59 = vector.broadcast %c0_i32_30 : i32 to vector<64x1xi32>
    %60 = arith.cmpi sge, %58, %59 : vector<64x1xi32>
    %c1_i32_31 = arith.constant 1 : i32
    %61 = vector.broadcast %c1_i32_31 : i32 to vector<64x1xi32>
    %62 = arith.addi %28, %61 : vector<64x1xi32>
    %c8_i32_32 = arith.constant 8 : i32
    %63 = vector.broadcast %c8_i32_32 : i32 to vector<64x1xi32>
    %64 = arith.cmpi slt, %62, %63 : vector<64x1xi32>
    %65 = arith.andi %60, %64 : vector<64x1xi1>
    %cst_33 = arith.constant 0.000000e+00 : bf16
    %66 = vector.broadcast %cst_33 : bf16 to vector<64x128xbf16>
    %67 = vector.shape_cast %65 : vector<64x1xi1> to vector<64x1xi1>
    %68 = vector.broadcast %67 : vector<64x1xi1> to vector<64x128xi1>
    %69 = arith.select %68, %56, %66 : vector<64x128xi1>, vector<64x128xbf16>
    %c2 = arith.constant 2 : index
    %c0_34 = arith.constant 0 : index
    %c0_35 = arith.constant 0 : index
    %70 = vector.load %arg4[%c2, %c0_34, %c0_35] : memref<9x128x128xbf16, #tpu.memory_space<vmem>>, vector<1x128x128xbf16>
    %71 = vector.shape_cast %70 : vector<1x128x128xbf16> to vector<128x128xbf16>
    %cst_36 = arith.constant dense<0.000000e+00> : vector<64x128xf32>
    %72 = tpu.matmul %69, %71, %cst_36 {dimension_numbers = #tpu.dot_dimension_numbers<[1], [0], [0], [1], [0, 0, 1, 1], [], []>} : vector<64x128xbf16>, vector<128x128xbf16>, vector<64x128xf32> -> vector<64x128xf32>
    %73 = arith.addf %54, %72 : vector<64x128xf32>
    %c15 = arith.constant 15 : index
    %c0_37 = arith.constant 0 : index
    %74 = vector.load %arg10[%c15, %c0_37] : memref<96x128xf32, #tpu.memory_space<vmem>>, vector<64x128xf32>
    %75 = arith.truncf %74 : vector<64x128xf32> to vector<64x128xbf16>
    %c-1_i32_38 = arith.constant -1 : i32
    %76 = vector.broadcast %c-1_i32_38 : i32 to vector<64x1xi32>
    %77 = arith.addi %28, %76 : vector<64x1xi32>
    %c0_i32_39 = arith.constant 0 : i32
    %78 = vector.broadcast %c0_i32_39 : i32 to vector<64x1xi32>
    %79 = arith.cmpi sge, %77, %78 : vector<64x1xi32>
    %c-1_i32_40 = arith.constant -1 : i32
    %80 = vector.broadcast %c-1_i32_40 : i32 to vector<64x1xi32>
    %81 = arith.addi %28, %80 : vector<64x1xi32>
    %c8_i32_41 = arith.constant 8 : i32
    %82 = vector.broadcast %c8_i32_41 : i32 to vector<64x1xi32>
    %83 = arith.cmpi slt, %81, %82 : vector<64x1xi32>
    %84 = arith.andi %79, %83 : vector<64x1xi1>
    %cst_42 = arith.constant 0.000000e+00 : bf16
    %85 = vector.broadcast %cst_42 : bf16 to vector<64x128xbf16>
    %86 = vector.shape_cast %84 : vector<64x1xi1> to vector<64x1xi1>
    %87 = vector.broadcast %86 : vector<64x1xi1> to vector<64x128xi1>
    %88 = arith.select %87, %75, %85 : vector<64x128xi1>, vector<64x128xbf16>
    %c3 = arith.constant 3 : index
    %c0_43 = arith.constant 0 : index
    %c0_44 = arith.constant 0 : index
    %89 = vector.load %arg4[%c3, %c0_43, %c0_44] : memref<9x128x128xbf16, #tpu.memory_space<vmem>>, vector<1x128x128xbf16>
    %90 = vector.shape_cast %89 : vector<1x128x128xbf16> to vector<128x128xbf16>
    %cst_45 = arith.constant dense<0.000000e+00> : vector<64x128xf32>
    %91 = tpu.matmul %88, %90, %cst_45 {dimension_numbers = #tpu.dot_dimension_numbers<[1], [0], [0], [1], [0, 0, 1, 1], [], []>} : vector<64x128xbf16>, vector<128x128xbf16>, vector<64x128xf32> -> vector<64x128xf32>
    %92 = arith.addf %73, %91 : vector<64x128xf32>
    %c16_46 = arith.constant 16 : index
    %c0_47 = arith.constant 0 : index
    %93 = vector.load %arg10[%c16_46, %c0_47] : memref<96x128xf32, #tpu.memory_space<vmem>>, vector<64x128xf32>
    %94 = arith.truncf %93 : vector<64x128xf32> to vector<64x128xbf16>
    %c4 = arith.constant 4 : index
    %c0_48 = arith.constant 0 : index
    %c0_49 = arith.constant 0 : index
    %95 = vector.load %arg4[%c4, %c0_48, %c0_49] : memref<9x128x128xbf16, #tpu.memory_space<vmem>>, vector<1x128x128xbf16>
    %96 = vector.shape_cast %95 : vector<1x128x128xbf16> to vector<128x128xbf16>
    %cst_50 = arith.constant dense<0.000000e+00> : vector<64x128xf32>
    %97 = tpu.matmul %94, %96, %cst_50 {dimension_numbers = #tpu.dot_dimension_numbers<[1], [0], [0], [1], [0, 0, 1, 1], [], []>} : vector<64x128xbf16>, vector<128x128xbf16>, vector<64x128xf32> -> vector<64x128xf32>
    %98 = arith.addf %92, %97 : vector<64x128xf32>
    %c17 = arith.constant 17 : index
    %c0_51 = arith.constant 0 : index
    %99 = vector.load %arg10[%c17, %c0_51] : memref<96x128xf32, #tpu.memory_space<vmem>>, vector<64x128xf32>
    %100 = arith.truncf %99 : vector<64x128xf32> to vector<64x128xbf16>
    %c1_i32_52 = arith.constant 1 : i32
    %101 = vector.broadcast %c1_i32_52 : i32 to vector<64x1xi32>
    %102 = arith.addi %28, %101 : vector<64x1xi32>
    %c0_i32_53 = arith.constant 0 : i32
    %103 = vector.broadcast %c0_i32_53 : i32 to vector<64x1xi32>
    %104 = arith.cmpi sge, %102, %103 : vector<64x1xi32>
    %c1_i32_54 = arith.constant 1 : i32
    %105 = vector.broadcast %c1_i32_54 : i32 to vector<64x1xi32>
    %106 = arith.addi %28, %105 : vector<64x1xi32>
    %c8_i32_55 = arith.constant 8 : i32
    %107 = vector.broadcast %c8_i32_55 : i32 to vector<64x1xi32>
    %108 = arith.cmpi slt, %106, %107 : vector<64x1xi32>
    %109 = arith.andi %104, %108 : vector<64x1xi1>
    %cst_56 = arith.constant 0.000000e+00 : bf16
    %110 = vector.broadcast %cst_56 : bf16 to vector<64x128xbf16>
    %111 = vector.shape_cast %109 : vector<64x1xi1> to vector<64x1xi1>
    %112 = vector.broadcast %111 : vector<64x1xi1> to vector<64x128xi1>
    %113 = arith.select %112, %100, %110 : vector<64x128xi1>, vector<64x128xbf16>
    %c5 = arith.constant 5 : index
    %c0_57 = arith.constant 0 : index
    %c0_58 = arith.constant 0 : index
    %114 = vector.load %arg4[%c5, %c0_57, %c0_58] : memref<9x128x128xbf16, #tpu.memory_space<vmem>>, vector<1x128x128xbf16>
    %115 = vector.shape_cast %114 : vector<1x128x128xbf16> to vector<128x128xbf16>
    %cst_59 = arith.constant dense<0.000000e+00> : vector<64x128xf32>
    %116 = tpu.matmul %113, %115, %cst_59 {dimension_numbers = #tpu.dot_dimension_numbers<[1], [0], [0], [1], [0, 0, 1, 1], [], []>} : vector<64x128xbf16>, vector<128x128xbf16>, vector<64x128xf32> -> vector<64x128xf32>
    %117 = arith.addf %98, %116 : vector<64x128xf32>
    %c23 = arith.constant 23 : index
    %c0_60 = arith.constant 0 : index
    %118 = vector.load %arg10[%c23, %c0_60] : memref<96x128xf32, #tpu.memory_space<vmem>>, vector<64x128xf32>
    %119 = arith.truncf %118 : vector<64x128xf32> to vector<64x128xbf16>
    %c-1_i32_61 = arith.constant -1 : i32
    %120 = vector.broadcast %c-1_i32_61 : i32 to vector<64x1xi32>
    %121 = arith.addi %28, %120 : vector<64x1xi32>
    %c0_i32_62 = arith.constant 0 : i32
    %122 = vector.broadcast %c0_i32_62 : i32 to vector<64x1xi32>
    %123 = arith.cmpi sge, %121, %122 : vector<64x1xi32>
    %c-1_i32_63 = arith.constant -1 : i32
    %124 = vector.broadcast %c-1_i32_63 : i32 to vector<64x1xi32>
    %125 = arith.addi %28, %124 : vector<64x1xi32>
    %c8_i32_64 = arith.constant 8 : i32
    %126 = vector.broadcast %c8_i32_64 : i32 to vector<64x1xi32>
    %127 = arith.cmpi slt, %125, %126 : vector<64x1xi32>
    %128 = arith.andi %123, %127 : vector<64x1xi1>
    %cst_65 = arith.constant 0.000000e+00 : bf16
    %129 = vector.broadcast %cst_65 : bf16 to vector<64x128xbf16>
    %130 = vector.shape_cast %128 : vector<64x1xi1> to vector<64x1xi1>
    %131 = vector.broadcast %130 : vector<64x1xi1> to vector<64x128xi1>
    %132 = arith.select %131, %119, %129 : vector<64x128xi1>, vector<64x128xbf16>
    %c6 = arith.constant 6 : index
    %c0_66 = arith.constant 0 : index
    %c0_67 = arith.constant 0 : index
    %133 = vector.load %arg4[%c6, %c0_66, %c0_67] : memref<9x128x128xbf16, #tpu.memory_space<vmem>>, vector<1x128x128xbf16>
    %134 = vector.shape_cast %133 : vector<1x128x128xbf16> to vector<128x128xbf16>
    %cst_68 = arith.constant dense<0.000000e+00> : vector<64x128xf32>
    %135 = tpu.matmul %132, %134, %cst_68 {dimension_numbers = #tpu.dot_dimension_numbers<[1], [0], [0], [1], [0, 0, 1, 1], [], []>} : vector<64x128xbf16>, vector<128x128xbf16>, vector<64x128xf32> -> vector<64x128xf32>
    %136 = arith.addf %117, %135 : vector<64x128xf32>
    %c24 = arith.constant 24 : index
    %c0_69 = arith.constant 0 : index
    %137 = vector.load %arg10[%c24, %c0_69] : memref<96x128xf32, #tpu.memory_space<vmem>>, vector<64x128xf32>
    %138 = arith.truncf %137 : vector<64x128xf32> to vector<64x128xbf16>
    %c7_70 = arith.constant 7 : index
    %c0_71 = arith.constant 0 : index
    %c0_72 = arith.constant 0 : index
    %139 = vector.load %arg4[%c7_70, %c0_71, %c0_72] : memref<9x128x128xbf16, #tpu.memory_space<vmem>>, vector<1x128x128xbf16>
    %140 = vector.shape_cast %139 : vector<1x128x128xbf16> to vector<128x128xbf16>
    %cst_73 = arith.constant dense<0.000000e+00> : vector<64x128xf32>
    %141 = tpu.matmul %138, %140, %cst_73 {dimension_numbers = #tpu.dot_dimension_numbers<[1], [0], [0], [1], [0, 0, 1, 1], [], []>} : vector<64x128xbf16>, vector<128x128xbf16>, vector<64x128xf32> -> vector<64x128xf32>
    %142 = arith.addf %136, %141 : vector<64x128xf32>
    %c25 = arith.constant 25 : index
    %c0_74 = arith.constant 0 : index
    %143 = vector.load %arg10[%c25, %c0_74] : memref<96x128xf32, #tpu.memory_space<vmem>>, vector<64x128xf32>
    %144 = arith.truncf %143 : vector<64x128xf32> to vector<64x128xbf16>
    %c1_i32_75 = arith.constant 1 : i32
    %145 = vector.broadcast %c1_i32_75 : i32 to vector<64x1xi32>
    %146 = arith.addi %28, %145 : vector<64x1xi32>
    %c0_i32_76 = arith.constant 0 : i32
    %147 = vector.broadcast %c0_i32_76 : i32 to vector<64x1xi32>
    %148 = arith.cmpi sge, %146, %147 : vector<64x1xi32>
    %c1_i32_77 = arith.constant 1 : i32
    %149 = vector.broadcast %c1_i32_77 : i32 to vector<64x1xi32>
    %150 = arith.addi %28, %149 : vector<64x1xi32>
    %c8_i32_78 = arith.constant 8 : i32
    %151 = vector.broadcast %c8_i32_78 : i32 to vector<64x1xi32>
    %152 = arith.cmpi slt, %150, %151 : vector<64x1xi32>
    %153 = arith.andi %148, %152 : vector<64x1xi1>
    %cst_79 = arith.constant 0.000000e+00 : bf16
    %154 = vector.broadcast %cst_79 : bf16 to vector<64x128xbf16>
    %155 = vector.shape_cast %153 : vector<64x1xi1> to vector<64x1xi1>
    %156 = vector.broadcast %155 : vector<64x1xi1> to vector<64x128xi1>
    %157 = arith.select %156, %144, %154 : vector<64x128xi1>, vector<64x128xbf16>
    %c8_80 = arith.constant 8 : index
    %c0_81 = arith.constant 0 : index
    %c0_82 = arith.constant 0 : index
    %158 = vector.load %arg4[%c8_80, %c0_81, %c0_82] : memref<9x128x128xbf16, #tpu.memory_space<vmem>>, vector<1x128x128xbf16>
    %159 = vector.shape_cast %158 : vector<1x128x128xbf16> to vector<128x128xbf16>
    %cst_83 = arith.constant dense<0.000000e+00> : vector<64x128xf32>
    %160 = tpu.matmul %157, %159, %cst_83 {dimension_numbers = #tpu.dot_dimension_numbers<[1], [0], [0], [1], [0, 0, 1, 1], [], []>} : vector<64x128xbf16>, vector<128x128xbf16>, vector<64x128xf32> -> vector<64x128xf32>
    %161 = arith.addf %142, %160 : vector<64x128xf32>
    %c0_84 = arith.constant 0 : index
    %c0_85 = arith.constant 0 : index
    %162 = vector.load %arg5[%c0_84, %c0_85] : memref<1x128xf32, #tpu.memory_space<vmem>>, vector<1x128xf32>
    %163 = vector.broadcast %162 : vector<1x128xf32> to vector<64x128xf32>
    %164 = arith.addf %161, %163 : vector<64x128xf32>
    %c0_86 = arith.constant 0 : index
    %c0_87 = arith.constant 0 : index
    %c0_88 = arith.constant 0 : index
    %165 = vector.load %arg6[%c0_86, %c0_87, %c0_88] : memref<1x64x128xbf16, #tpu.memory_space<vmem>>, vector<1x64x128xbf16>
    %166 = vector.shape_cast %165 : vector<1x64x128xbf16> to vector<64x128xbf16>
    %c0_89 = arith.constant 0 : index
    %c0_90 = arith.constant 0 : index
    %167 = vector.load %arg7[%c0_89, %c0_90] : memref<128x128xbf16, #tpu.memory_space<vmem>>, vector<128x128xbf16>
    %cst_91 = arith.constant dense<0.000000e+00> : vector<64x128xf32>
    %168 = tpu.matmul %166, %167, %cst_91 {dimension_numbers = #tpu.dot_dimension_numbers<[1], [0], [0], [1], [0, 0, 1, 1], [], []>} : vector<64x128xbf16>, vector<128x128xbf16>, vector<64x128xf32> -> vector<64x128xf32>
    %c0_92 = arith.constant 0 : index
    %c0_93 = arith.constant 0 : index
    %169 = vector.load %arg8[%c0_92, %c0_93] : memref<1x128xf32, #tpu.memory_space<vmem>>, vector<1x128xf32>
    %170 = vector.broadcast %169 : vector<1x128xf32> to vector<64x128xf32>
    %171 = arith.addf %168, %170 : vector<64x128xf32>
    %172 = arith.addf %164, %171 : vector<64x128xf32>
    %cst_94 = arith.constant 0.000000e+00 : f32
    %173 = vector.broadcast %cst_94 : f32 to vector<64x128xf32>
    %174 = arith.maximumf %172, %173 : vector<64x128xf32>
    %c0_95 = arith.constant 0 : index
    %c0_96 = arith.constant 0 : index
    %c0_97 = arith.constant 0 : index
    %175 = vector.load %arg9[%c0_95, %c0_96, %c0_97] : memref<1x64x128xf32, #tpu.memory_space<vmem>>, vector<1x64x128xf32>
    %176 = vector.shape_cast %175 : vector<1x64x128xf32> to vector<64x128xf32>
    %177 = vector.shape_cast %174 : vector<64x128xf32> to vector<1x64x128xf32>
    tpu.vector_store %arg9[%c0_95, %c0_96, %c0_97], %177 {strides = array<i32>} : memref<1x64x128xf32, #tpu.memory_space<vmem>>, vector<1x64x128xf32>,
    return
  }
  func.func @transform_0(%arg0: i32) -> (i32, i32, i32) {
    %c0_i32 = arith.constant 0 : i32
    %c0_i32_0 = arith.constant 0 : i32
    %c0_i32_1 = arith.constant 0 : i32
    return %arg0, %c0_i32, %c0_i32_0 : i32, i32, i32
  }
  func.func @transform_1(%arg0: i32) -> (i32, i32) {
    %c0_i32 = arith.constant 0 : i32
    %c0_i32_0 = arith.constant 0 : i32
    %c0_i32_1 = arith.constant 0 : i32
    return %c0_i32, %c0_i32_0 : i32, i32
  }
  func.func @transform_2(%arg0: i32) -> (i32, i32) {
    %c0_i32 = arith.constant 0 : i32
    %c0_i32_0 = arith.constant 0 : i32
    %c0_i32_1 = arith.constant 0 : i32
    return %c0_i32, %c0_i32_0 : i32, i32
  }
  func.func @transform_3(%arg0: i32) -> (i32, i32, i32) {
    %c0_i32 = arith.constant 0 : i32
    %c0_i32_0 = arith.constant 0 : i32
    %c0_i32_1 = arith.constant 0 : i32
    %c0_i32_2 = arith.constant 0 : i32
    return %c0_i32, %c0_i32_0, %c0_i32_1 : i32, i32, i32
  }
  func.func @transform_4(%arg0: i32) -> (i32, i32) {
    %c0_i32 = arith.constant 0 : i32
    %c0_i32_0 = arith.constant 0 : i32
    %c0_i32_1 = arith.constant 0 : i32
    return %c0_i32, %c0_i32_0 : i32, i32
  }
  func.func @transform_5(%arg0: i32) -> (i32, i32, i32) {
    %c0_i32 = arith.constant 0 : i32
    %c0_i32_0 = arith.constant 0 : i32
    %c0_i32_1 = arith.constant 0 : i32
    return %arg0, %c0_i32, %c0_i32_0 : i32, i32, i32
  }
  func.func @transform_6(%arg0: i32) -> (i32, i32) {
    %c0_i32 = arith.constant 0 : i32
    %c0_i32_0 = arith.constant 0 : i32
    %c0_i32_1 = arith.constant 0 : i32
    return %c0_i32, %c0_i32_0 : i32, i32
  }
  func.func @transform_7(%arg0: i32) -> (i32, i32) {
    %c0_i32 = arith.constant 0 : i32
    %c0_i32_0 = arith.constant 0 : i32
    %c0_i32_1 = arith.constant 0 : i32
    return %c0_i32, %c0_i32_0 : i32, i32
  }
  func.func @transform_8(%arg0: i32) -> (i32, i32, i32) {
    %c0_i32 = arith.constant 0 : i32
    %c0_i32_0 = arith.constant 0 : i32
    %c0_i32_1 = arith.constant 0 : i32
    return %arg0, %c0_i32, %c0_i32_0 : i32, i32, i32
  }
}

</mosaic_0001>

<bundles_post_ra>
// kernel: tpu_custom_call.1
= control target key start
LH: loop header
LB: loop body
LE: loop exit
PB: predicated region body
PF: predicated region fallthrough
CT: control target
= control target key end

     0   :  { %s3965_s0 = inlined_call_operand.hbm [shape: bf16[2,64,128], index: 0, kind: input, shape index: {}]   ;;  %s3966_s1 = inlined_call_operand.hbm [shape: bf16[128,128], index: 1, kind: input, shape index: {}]   ;;  %s3967_s2 = inlined_call_operand.vmem [shape: f32[1,128], index: 2, kind: input, shape index: {}]   ;;  %s3968_s3 = inlined_call_operand.hbm [shape: bf16[9,128,128], index: 3, kind: input, shape index: {}]   ;;  %s3969_s4 = inlined_call_operand.vmem [shape: f32[1,128], index: 4, kind: input, shape index: {}]   ;;  %s3970_s5 = inlined_call_operand.hbm [shape: bf16[2,64,128], index: 5, kind: input, shape index: {}]   ;;  %s3971_s6 = inlined_call_operand.hbm [shape: bf16[128,128], index: 6, kind: input, shape index: {}]   ;;  %s3972_s7 = inlined_call_operand.vmem [shape: f32[1,128], index: 7, kind: input, shape index: {}]   ;;  %s3973_s8 = inlined_call_operand.hbm [shape: f32[2,64,128], index: 8, kind: output, shape index: {}]  }
   0x1   :  { %3979 = sst [smem:[#allocation20_spill]] %s3965_s0 }
   0x2   :  { %3980 = sst [smem:[#allocation21_spill]] %s3966_s1 }
   0x3   :  { %3981 = sst [smem:[#allocation22_spill]] %s3968_s3 }
   0x4   :  { %3982 = sst [smem:[#allocation23_spill]] %s3971_s6 }
   0x5   :  { %13 = vsyncpa [#allocation4], 0 }
   0x6   :  { %15 = vsyncpa [#allocation4 + $0x1], 0 }
   0x7   :  { %16 = vsyncpa [#allocation7], 0 }
   0x8   :  { %17 = vsyncpa [#allocation10], 0 }
   0x9   :  { %19 = vsyncpa [#allocation10 + $0x1], 0 }
   0xa   :  { %20 = vsyncpa [#allocation5], 0 }
   0xb   :  { %22 = vsyncpa [#allocation5 + $0x1], 0  ;;  %s3226_s27 = smov 0   ;;  %s3228_s28 = smov 0  }
   0xc   :  { %s3230_s29 = smov 0   ;;  %s3232_s30 = smov 0  }
   0xd LB: > { %3983 = sst [smem:[#allocation18_spill]] %s3167_s29  ;;  %s3247_s9 = sadd.s32 4294967295, %s3171_s30   ;;  %s3171_s30 = sphi %s3232_s30, %s4040_s30   ;;  %s3167_s29 = sphi %s3230_s29, %s4037_s29   ;;  %s3163_s28 = sphi %s3228_s28, %s4039_s28   ;;  %s3159_s27 = sphi %s3226_s27, %s4038_s27  }
   0xe   : > { %s2322_s10 = sadd.s32 4294967294, %s3171_s30   ;;  %p48_p0 = scmp.ne.s32.totalorder %s3163_s28, %s3159_s27 }
   0xf   : > { %p49_p1 = scmp.eq.s32.totalorder %s3247_s9, 0  ;;  %p224_p2 = scmp.eq.s32.totalorder %s3247_s9, 1 }
  0x10   : > { %p230_p3 = scmp.eq.s32.totalorder %s2322_s10, 1  ;;  %p2323_p5 = scmp.ge.s32.totalorder %s3171_s30, 1 }
  0x11   : > { %p3256_p4 = por %p49_p1, %p48_p0  ;;  %p237_p7 = scmp.lt.s32.totalorder %s3171_s30, 3 }
  0x12   : > { %p3261_p6 = por %p230_p3, %p48_p0  ;;  %s3986_s1 = sld [smem:[#allocation21_spill]] }
  0x13   : > { %p3269_p8 = pnand %p2323_p5, %p237_p7  ;;  %s3173_s17 = smov [#allocation6]  }
  0x14   : > { %s250_s18 = sshll.u32 %s3173_s17, 4  ;;  %s3989_s6 = sld [smem:[#allocation23_spill]]  ;;  %s251_s18 = int_to_ptr.vmem [resolvable:$true] %s250_s18 }
  0x15   : > { %p2871_p9 = pneg %p3269_p8  ;;  %s3974_s23 = smov 64  }
  0x16   : > { %s3976_s24 = smov 4   ;;  %s3176_s25 = smov [#allocation11]  }
  0x17   : > { %p3277_p10 = pnand %p2871_p9, %p49_p1  ;;  %s284_s26 = sshll.u32 %s3176_s25, 4  ;;  %s285_s26 = int_to_ptr.vmem [resolvable:$true] %s284_s26 }
  0x18   : > { %s248_s15 = sshll.u32 %s3986_s1, 4  ;;  %s3990_s3 = sld [smem:[#allocation22_spill]]  ;;  %s249_s15 = int_to_ptr.hbm [resolvable:$true] %s248_s15 }
  0x19   : > { %2874 = dma.hbm_to_vmem [thread:$0]  (!%p3277_p10), %s249_s15, 1024, %s251_s18, [#allocation7], %s3974_s23, %s3974_s23, %s3976_s24  }
  0x1a   : > { %s282_s22 = sshll.u32 %s3989_s6, 4  ;;  %s3177_s15 = smov [#allocation8]   ;;  %s283_s22 = int_to_ptr.hbm [resolvable:$true] %s282_s22 }
  0x1b   : > { %2880 = dma.hbm_to_vmem [thread:$0]  (!%p3277_p10), %s283_s22, 1024, %s285_s26, [#allocation10], %s3974_s23, %s3974_s23, %s3976_s24  }
  0x1c   : > { %s267_s17 = sshll.u32 %s3177_s15, 4  ;;  %s3299_s18 = sadd.s32 1, %s3171_s30   ;;  %s268_s17 = int_to_ptr.vmem [resolvable:$true] %s267_s17 }
  0x1d   : > { %s32_s20 = ssub.s32 %s3171_s30, %s3299_s18  ;;  %s35_s21 = sadd.s32 1, %s3167_s29 }
  0x1e   : > { %s265_s14 = sshll.u32 %s3990_s3, 4  ;;  %p33_p12 = scmp.eq.s32.totalorder %s32_s20, 0  ;;  %s266_s14 = int_to_ptr.hbm [resolvable:$true] %s265_s14 }
  0x1f   : > { %2877 = dma.hbm_to_vmem [thread:$0]  (!%p3277_p10), %s266_s14, 9216, %s268_s17, [#allocation7], %s3974_s23, %s3974_s23, %s3976_s24  }
  0x20   : > { %p42_p13 = scmp.ne.s32.totalorder %s3167_s29, %s3163_s28  ;;  %p43_p0 = scmp.eq.s32.totalorder %s3171_s30, 0 }
  0x21   : > { %p2895_p3 = scmp.lt.s32.totalorder %s3171_s30, 2  ;;  %s301_s19 = sand.u32 1, %s3167_s29  }
  0x22   : > { %s3314_s22 = scalar_select %p33_p12, %s3167_s29, %s35_s21  }
  0x23   : > { %p44_p5 = por %p43_p0, %p42_p13  ;;  %p3318_p7 = por %p224_p2, %p42_p13 }
  0x24   : > { %3991 = sst [smem:[#allocation19_spill]] %s3314_s22  ;;  %s2730_s26 = sshll.u32 %s3171_s30, 5 }
  0x25   : > { %s2328_s10 = sshll.u32 %s301_s19, 5  ;;  %s3993_s0 = sld [smem:[#allocation20_spill]] }
  0x26   : > { %s305_s20 = scalar_lea.vmem [#allocation3], %s2328_s10  ;;  %p3329_p9 = pnand %p2895_p3, %p44_p5 }
  0x27   : > { %s313_s23 = sshll.u32 %s305_s20, 4  ;;  %s332_s3 = scalar_lea.hbm %s3970_s5, %s2730_s26  ;;  %s314_s23 = int_to_ptr.vmem [resolvable:$true] %s313_s23 }
  0x28   : > { %s327_s6 = scalar_lea.vmem [#allocation9], %s2328_s10  ;;  %s333_s13 = sshll.u32 %s332_s3, 4  ;;  %s334_s13 = int_to_ptr.hbm [resolvable:$true] %s333_s13 }
  0x29   : > { %s3336_s22 = sshll.u32 %s327_s6, 4  ;;  %s302_s14 = scalar_lea.sflag [#allocation4], %s301_s19  ;;  %s336_s22 = int_to_ptr.vmem [resolvable:$true] %s3336_s22 }
  0x2a   : > { %p3037_p10 = pneg %p3329_p9 }
  0x2b   : > { %s310_s15 = scalar_lea.hbm %s3993_s0, %s2730_s26  ;;  %s3040_s24 = scalar_lea.hbm %s3993_s0, 64 }
  0x2c   : > { %s311_s17 = sshll.u32 %s310_s15, 4  ;;  %s312_s17 = int_to_ptr.hbm [resolvable:$true] %s311_s17 }
  0x2d   : > { %s3033_s15 = sshra.s32 %s312_s17, 4  ;;  %s3034_s15 = int_to_ptr.hbm [resolvable:$true] %s3033_s15 }
  0x2e   : > { %s3035_s20 = scalar_lea.hbm %s3034_s15, 32  ;;  %p3041_p0 = scmp.lt.s32.totalorder %s3034_s15, %s3993_s0 }
  0x2f   : > { %p3036_p2 = scmp.ne.s32.totalorder %s3034_s15, %s3035_s20  ;;  %p3042_p3 = scmp.lt.s32.totalorder %s3040_s24, %s3035_s20 }
  0x31   : > { %p3038_p12 = pnand %p3037_p10, %p3036_p2  ;;  %p3043_p5 = por %p3042_p3, %p3041_p0 }
  0x33   : > { %p3039_p13 = pneg %p3038_p12 }
  0x35   : > { %p3044_p11 = pnand %p3043_p5, %p3039_p13 }
  0x37   : > { %3047 = shalt.err (!%p3044_p11)
}
  0x38   : > { %s3995_s3 = smov 4   ;;  %s3996_s6 = smov 64  }
  0x39   : > { %2884 = dma.hbm_to_vmem [thread:$0]  (!%p3329_p9), %s312_s17, 512, %s314_s23, %s302_s14, %s3996_s6, %s3996_s6, %s3995_s3  }
  0x3a   : > { %s323_s29 = sand.u32 1, %s3171_s30   ;;  %s3063_s1 = sshra.s32 %s334_s13, 4  ;;  %s3064_s1 = int_to_ptr.hbm [resolvable:$true] %s3063_s1 }
  0x3b   : > { %s324_s19 = scalar_lea.sflag [#allocation10], %s323_s29  ;;  %s3065_s15 = scalar_lea.hbm %s3064_s1, 32 }
  0x3c   : > { %p3066_p2 = scmp.ne.s32.totalorder %s3064_s1, %s3065_s15  ;;  %s3070_s26 = scalar_lea.hbm %s3970_s5, 64 }
  0x3d   : > { %p3071_p13 = scmp.lt.s32.totalorder %s3064_s1, %s3970_s5  ;;  %p3072_p0 = scmp.lt.s32.totalorder %s3070_s26, %s3065_s15 }
  0x3e   : > { %p3068_p11 = pnand %p3066_p2, %p3037_p10 }
  0x3f   : > { %p3073_p3 = por %p3072_p0, %p3071_p13 }
  0x40   : > { %p3069_p12 = pneg %p3068_p11 }
  0x42   : > { %p3074_p5 = pnand %p3073_p3, %p3069_p12 }
  0x44   : > { %3077 = shalt.err (!%p3074_p5)
}
  0x45   : > { %2887 = dma.hbm_to_vmem [thread:$0]  (!%p3329_p9), %s334_s13, 512, %s336_s22, %s324_s19, %s3996_s6, %s3996_s6, %s3995_s3  }
  0x46   : > { %347 = sbr.rel (%p3269_p8) target bundleno = 570 (0x23a), region = 52  ;;  %s3373_s23 = sand.u32 (!%p3269_p8), 1, %s3163_s28  }
  0x47   : > { %s2335_s0 = sshll.u32 (!%p3269_p8), %s3373_s23, 5  ;;  %s350_s17 = scalar_lea.sflag (!%p3269_p8), [#allocation4], %s3373_s23 }
  0x48   : > { %s3377_s14 = scalar_lea.vmem (!%p3269_p8), [#allocation3], %s2335_s0 }
  0x4b   : > { %3138 = dma.done.wait (%p3256_p4), %s350_s17, 512  }
  0x4c   : > { %3140 = vsyncadd (%p3256_p4), %s350_s17, 4294966784 }
  0x4d   : > { %3142 = dma.done.wait (%p49_p1), [#allocation7], 10240  }
  0x4e   : > { %3144 = vsyncadd (%p49_p1), [#allocation7], 4294957056  ;;  %s369_s16 = sand.u32 1, %s3247_s9   ;;  %s3388_s21 = scalar_lea.vmem [#allocation9], %s2335_s0 }
  0x4f   : > { %s370_s22 = scalar_lea.sflag [#allocation10], %s369_s16 }
  0x50   : > { %3146 = dma.done.wait (%p3256_p4), %s370_s22, 512  }
  0x51   : > { %3148 = vsyncadd (%p3256_p4), %s370_s22, 4294966784 }
  0x52   : > { %3150 = dma.done.wait (%p49_p1), [#allocation10], 1024  }
  0x53   : > { %3152 = vsyncadd (%p49_p1), [#allocation10], 4294966272  ;;  %v2743_v0 = vld [vmem:[#allocation6 + $0x38] sm:$0xff]  ;;  %v2742_v1 = vld [vmem:[#allocation6 + $0x30] sm:$0xff]  ;;  %v3178_v8 = vmov 0.0   ;;  %v575_v43 = vlaneseq  ;;  %s2340_s1 = sshll.u32 %s3373_s23, 6 }
  0x54   : > { %530 = vmatpush.bf16.msra.mxu0 %v2743_v0  ;;  %2829 = vmatpush.bf16.msra.mxu3 %v2743_v0  ;;  %v2741_v2 = vld [vmem:[#allocation6 + $0x28] sm:$0xff]  ;;  %v2740_v3 = vld [vmem:[#allocation6 + $0x20] sm:$0xff]  ;;  %v2739_v4 = vld [vmem:[#allocation6 + $0x18] sm:$0xff]  ;;  %418 = vst [vmem:[#allocation2] sm:$0xff] %v3178_v8  ;;  %s3894_s15 = scalar_lea.vmem [#allocation12], %s2340_s1  ;;  %s2828_s20 = sshll.u32 %s3247_s9, 6 }
  0x55   : > { %v2759_v5 = vld [vmem:[#allocation8 + $0x78] sm:$0xff]  ;;  %v2738_v6 = vld [vmem:[#allocation6 + $0x10] sm:$0xff]  ;;  %419 = vst [vmem:[#allocation2 + $0x8] sm:$0xff] %v3178_v8  ;;  %v2737_v11 = vld [vmem:[#allocation6 + $0x8] sm:$0xff]  ;;  %v3406_v46 = vshrl.u32 %v575_v43, 7  ;;  %s2194_s10 = scalar_lea.hbm %s3973_s8, %s2828_s20  ;;  %s2195_s0 = sshll.u32 %s3894_s15, 4  ;;  %s2196_s0 = int_to_ptr.vmem [resolvable:$true] %s2195_s0 }
  0x56   : > { %v2751_v7 = vld [vmem:[#allocation8 + $0x38] sm:$0xff]  ;;  %853 = vmatpush.bf16.msra.mxu1 %v2759_v5  ;;  %v2758_v9 = vld [vmem:[#allocation8 + $0x70] sm:$0xff]  ;;  %428 = vst [vmem:[#allocation2 + $0x50] sm:$0xff] %v3178_v8  ;;  %v2757_v12 = vld [vmem:[#allocation8 + $0x68] sm:$0xff]  ;;  %s2197_s17 = sshll.u32 %s2194_s10, 4  ;;  %s2183_s9 = scalar_lea.sflag [#allocation5], %s3373_s23  ;;  %s2198_s17 = int_to_ptr.hbm [resolvable:$true] %s2197_s17 }
  0x57   : > { %954 = vmatpush.bf16.msra.mxu2 %v2751_v7  ;;  %v2750_v10 = vld [vmem:[#allocation8 + $0x30] sm:$0xff]  ;;  %429 = vst [vmem:[#allocation2 + $0x58] sm:$0xff] %v3178_v8  ;;  %v2749_v13 = vld [vmem:[#allocation8 + $0x28] sm:$0xff]  ;;  %v2736_v14 = vld [vmem:[#allocation6] sm:$0xff]  ;;  %v577_v48 = vadd.s32 8, %v3406_v46  ;;  %v588_v49 = vand.u32 7, %v3406_v46 }
  0x58   : > { %531 = vmatpush.bf16.msra.mxu0 %v2742_v1  ;;  %2830 = vmatpush.bf16.msra.mxu3 %v2742_v1  ;;  %v2756_v15 = vld [vmem:[#allocation8 + $0x60] sm:$0xff]  ;;  %v2767_v16 = vld [vmem:[#allocation8 + $0xb8] sm:$0xff]  ;;  %v2734_v19 = vld [vmem:[%s3377_s14 + $0x10] sm:$0xff]  ;;  %v578_v5 = vadd.s32 16, %v3406_v46  ;;  %s3113_s11 = scalar_lea.hbm %s3973_s8, 128 }
  0x59   : > { %v2775_v17 = vld [vmem:[#allocation8 + $0xf8] sm:$0xff]  ;;  %v2732_v18 = vld [vmem:[%s3377_s14] sm:$0xff]  ;;  %v2733_v20 = vld [vmem:[%s3377_s14 + $0x8] sm:$0xff]  ;;  %v595_v54 = vand.u32 7, %v577_v48  ;;  %v696_v55 = vadd.s32 4294967295, %v588_v49 }
  0x5a   : > { %854 = vmatpush.bf16.msra.mxu1 %v2758_v9  ;;  %v2735_v21 = vld [vmem:[%s3377_s14 + $0x18] sm:$0xff]  ;;  %v2754_v23 = vld [vmem:[#allocation8 + $0x50] sm:$0xff]  ;;  %v2753_v24 = vld [vmem:[#allocation8 + $0x48] sm:$0xff]  ;;  %v579_v9 = vadd.s32 24, %v3406_v46  ;;  %s3107_s14 = sshra.s32 %s2198_s17, 4  ;;  %s3108_s14 = int_to_ptr.hbm [resolvable:$true] %s3107_s14 }
  0x5b   : > { %955 = vmatpush.bf16.msra.mxu2 %v2750_v10  ;;  %v2755_v22 = vld [vmem:[#allocation8 + $0x58] sm:$0xff]  ;;  %v2748_v25 = vld [vmem:[#allocation8 + $0x20] sm:$0xff]  ;;  %v2766_v26 = vld [vmem:[#allocation8 + $0xb0] sm:$0xff]  ;;  %v697_v61 = vadd.s32 4294967295, %v595_v54  ;;  %vm704_vm0 = vcmp.ge.s32.totalorder %v696_v55, 0  ;;  %s3109_s16 = scalar_lea.hbm %s3108_s14, 64  ;;  %p3114_p9 = scmp.lt.s32.totalorder %s3108_s14, %s3973_s8 }
  0x5c   : > { %532 = vmatpush.bf16.msra.mxu0 %v2741_v2  ;;  %2831 = vmatpush.bf16.msra.mxu3 %v2741_v2  ;;  %v2774_v27 = vld [vmem:[#allocation8 + $0xf0] sm:$0xff]  ;;  %v2752_v28 = vld [vmem:[#allocation8 + $0x40] sm:$0xff]  ;;  %v2747_v29 = vld [vmem:[#allocation8 + $0x18] sm:$0xff]  ;;  %p3110_p1 = scmp.ne.s32.totalorder %s3108_s14, %s3109_s16  ;;  %p3115_p10 = scmp.lt.s32.totalorder %s3113_s11, %s3109_s16 }
  0x5d   : > { %v2765_v30 = vld [vmem:[#allocation8 + $0xa8] sm:$0xff]  ;;  %v2746_v32 = vld [vmem:[#allocation8 + $0x10] sm:$0xff]  ;;  %v2764_v33 = vld [vmem:[#allocation8 + $0xa0] sm:$0xff]  ;;  %vm705_vm2 = vcmp.ge.s32.totalorder %v697_v61, 0 }
  0x5e   : > { %855 = vmatpush.bf16.msra.mxu1 %v2757_v12  ;;  %v2773_v31 = vld [vmem:[#allocation8 + $0xe8] sm:$0xff]  ;;  %v2772_v34 = vld [vmem:[#allocation8 + $0xe0] sm:$0xff]  ;;  %v2763_v36 = vld [vmem:[#allocation8 + $0x98] sm:$0xff]  ;;  %p3111_p4 = pnand %p3110_p1, %p3318_p7  ;;  %p3116_p2 = por %p3115_p10, %p3114_p9 }
  0x5f   : > { %956 = vmatpush.bf16.msra.mxu2 %v2749_v13  ;;  %v2745_v35 = vld [vmem:[#allocation8 + $0x8] sm:$0xff]  ;;  %v2771_v37 = vld [vmem:[#allocation8 + $0xd8] sm:$0xff]  ;;  %v2744_v38 = vld [vmem:[#allocation8] sm:$0xff] }
  0x60   : > { %533 = vmatpush.bf16.msra.mxu0 %v2740_v3  ;;  %2832 = vmatpush.bf16.msra.mxu3 %v2740_v3  ;;  %v2762_v39 = vld [vmem:[#allocation8 + $0x90] sm:$0xff]  ;;  %v2761_v41 = vld [vmem:[#allocation8 + $0x88] sm:$0xff]  ;;  %v2760_v44 = vld [vmem:[#allocation8 + $0x80] sm:$0xff]  ;;  %p3112_p8 = pneg %p3111_p4 }
  0x61   : > { %v2770_v40 = vld [vmem:[#allocation8 + $0xd0] sm:$0xff]  ;;  %v2769_v42 = vld [vmem:[#allocation8 + $0xc8] sm:$0xff]  ;;  %v2768_v45 = vld [vmem:[#allocation8 + $0xc0] sm:$0xff] }
  0x62   : > { %856 = vmatpush.bf16.msra.mxu1 %v2756_v15  ;;  %v3411_v47 = vld [vmem:[%s3967_s2] ss:$0 sm:$0xff]  ;;  %v2791_v51 = vld [vmem:[#allocation8 + $0x178] sm:$0xff]  ;;  %v2790_v56 = vld [vmem:[#allocation8 + $0x170] sm:$0xff]  ;;  %v602_v15 = vand.u32 7, %v578_v5  ;;  %p3117_p11 = pnand %p3116_p2, %p3112_p8 }
  0x63   : > { %957 = vmatpush.bf16.msra.mxu2 %v2748_v25  ;;  %v2783_v52 = vld [vmem:[#allocation8 + $0x138] sm:$0xff]  ;;  %v2782_v58 = vld [vmem:[#allocation8 + $0x130] sm:$0xff]  ;;  %v680_v59 = vld [vmem:[#allocation2 + $0x7] sm:$0xff] }
  0x64   : > { %534 = vmatpush.bf16.msra.mxu0 %v2739_v4  ;;  %2833 = vmatpush.bf16.msra.mxu3 %v2739_v4  ;;  %v2789_v63 = vld [vmem:[#allocation8 + $0x168] sm:$0xff]  ;;  %v688_v2 = vpack.c.bf16 %v680_v59, %v680_v59  ;;  %vm3422_vm1 = vmpackc.low %vm704_vm0, %vm704_vm0  ;;  %v2787_v43 = vld [vmem:[#allocation8 + $0x158] sm:$0xff] }
  0x65   : > { %v2781_v0 = vld [vmem:[#allocation8 + $0x128] sm:$0xff]  ;;  %vm3436_vm3 = vmpackc.low %vm705_vm2, %vm705_vm2 }
  0x66   : > { %857 = vmatpush.bf16.msra.mxu1 %v2755_v22  ;;  %v609_v22 = vand.u32 7, %v579_v9  ;;  %v2777_v13 = vld [vmem:[#allocation8 + $0x108] sm:$0xff] }
  0x67   : > { %958 = vmatpush.bf16.msra.mxu2 %v2747_v29 }
  0x68   : > { %535 = vmatpush.bf16.msra.mxu0 %v2738_v6  ;;  %2834 = vmatpush.bf16.msra.mxu3 %v2738_v6 }
  0x6a   : > { %858 = vmatpush.bf16.msra.mxu1 %v2754_v23 }
  0x6b   : > { %959 = vmatpush.bf16.msra.mxu2 %v2746_v32 }
  0x6c   : > { %536 = vmatpush.bf16.msra.mxu0 %v2737_v11  ;;  %2835 = vmatpush.bf16.msra.mxu3 %v2737_v11  ;;  %v752_v11 = vsel %vm3422_vm1, %v688_v2, 0 }
  0x6e   : > { %859 = vmatpush.bf16.msra.mxu1 %v2753_v24 }
  0x6f   : > { %960 = vmatpush.bf16.msra.mxu2 %v2745_v35  ;;  %v3452_v35 = vadd.s32 32, %v3406_v46 }
  0x70   : > { %537 = vmatpush.bf16.msra.mxu0 %v2736_v14  ;;  %2836 = vmatpush.bf16.msra.mxu3 %v2736_v14  ;;  %v1000_v14 = vadd.s32 1, %v595_v54  ;;  %v3479_v54 = vadd.s32 40, %v3406_v46 }
  0x71   : > { %v616_v55 = vand.u32 7, %v3452_v35 }
  0x72   : > { %860 = vmatpush.bf16.msra.mxu1 %v2752_v28  ;;  %vm1016_vm5 = vcmp.lt.s32.totalorder %v1000_v14, 8  ;;  %v698_v28 = vadd.s32 4294967295, %v602_v15 }
  0x73   : > { %538 = vmatmul.bf16.vlgmr.msra.gmra.mxu0 %v2732_v18  ;;  %548 = vmatmul.bf16.vlgmr.msra.gmra.mxu3 %v2734_v19  ;;  %v2780_v19 = vld [vmem:[#allocation8 + $0x120] sm:$0xff]  ;;  %vm3457_vm7 = vmpackc.low %vm1016_vm5, %vm1016_vm5 }
  0x74   : > { %1152 = vmatpush.bf16.msrb.mxu3 %v2767_v16  ;;  %1302 = vmatpush.bf16.msrb.mxu0 %v2775_v17  ;;  %v2788_v16 = vld [vmem:[#allocation8 + $0x160] sm:$0xff]  ;;  %vm706_vm8 = vcmp.ge.s32.totalorder %v698_v28, 0  ;;  %v3533_v28 = vadd.s32 48, %v3406_v46 }
  0x75   : > { %961 = vmatpush.bf16.msra.mxu2 %v2744_v38  ;;  %vm3498_vm11 = vmpackc.low %vm706_vm8, %vm706_vm8 }
  0x76   : > { %1416 = vmatpush.bf16.msrb.mxu1 %v2783_v52  ;;  %v2807_v52 = vld [vmem:[#allocation8 + $0x1f8] sm:$0xff] }
  0x78   : > { %1153 = vmatpush.bf16.msrb.mxu3 %v2766_v26  ;;  %1303 = vmatpush.bf16.msrb.mxu0 %v2774_v27 }
  0x79   : > { %1566 = vmatpush.bf16.msrb.mxu2 %v2791_v51  ;;  %v2779_v51 = vld [vmem:[#allocation8 + $0x118] sm:$0xff] }
  0x7a   : > { %1417 = vmatpush.bf16.msrb.mxu1 %v2782_v58 }
  0x7c   : > { %1154 = vmatpush.bf16.msrb.mxu3 %v2765_v30  ;;  %1304 = vmatpush.bf16.msrb.mxu0 %v2773_v31 }
  0x7d   : > { %1567 = vmatpush.bf16.msrb.mxu2 %v2790_v56 }
  0x7e   : > { %1418 = vmatpush.bf16.msrb.mxu1 %v2781_v0 }
  0x80   : > { %1155 = vmatpush.bf16.msrb.mxu3 %v2764_v33  ;;  %1305 = vmatpush.bf16.msrb.mxu0 %v2772_v34  ;;  %v699_v33 = vadd.s32 4294967295, %v609_v22  ;;  %v1002_v34 = vadd.s32 1, %v609_v22 }
  0x81   : > { %1568 = vmatpush.bf16.msrb.mxu2 %v2789_v63 }
  0x82   : > { %1419 = vmatpush.bf16.msrb.mxu1 %v2780_v19  ;;  %vm707_vm9 = vcmp.ge.s32.totalorder %v699_v33, 0  ;;  %vm1018_vm10 = vcmp.lt.s32.totalorder %v1002_v34, 8  ;;  %v2786_v19 = vld [vmem:[#allocation8 + $0x150] sm:$0xff] }
  0x83   : > { %543 = vmatmul.bf16.gmra.mxu0 %v2733_v20  ;;  %553 = vmatmul.bf16.gmra.mxu3 %v2735_v21  ;;  %v890_v21 = vunpack.c.l.b16 %v752_v11  ;;  %vm3504_vm12 = vmpackc.low %vm1018_vm10, %vm1018_vm10  ;;  %v623_v11 = vand.u32 7, %v3479_v54 }
  0x84   : > { %1156 = vmatpush.bf16.msrb.mxu3 %v2763_v36  ;;  %1306 = vmatpush.bf16.msrb.mxu0 %v2771_v37  ;;  %vm3516_vm13 = vmpackc.low %vm707_vm9, %vm707_vm9 }
  0x85   : > { %1569 = vmatpush.bf16.msrb.mxu2 %v2788_v16 }
  0x86   : > { %1420 = vmatpush.bf16.msrb.mxu1 %v2779_v51 }
  0x88   : > { %1157 = vmatpush.bf16.msrb.mxu3 %v2762_v39  ;;  %1307 = vmatpush.bf16.msrb.mxu0 %v2770_v40 }
  0x89   : > { %1570 = vmatpush.bf16.msrb.mxu2 %v2787_v43 }
  0x8c   : > { %1158 = vmatpush.bf16.msrb.mxu3 %v2761_v41  ;;  %1308 = vmatpush.bf16.msrb.mxu0 %v2769_v42  ;;  %v3465_v42 = vadd.s32 1, %v602_v15  ;;  %v2794_v15 = vld [vmem:[#allocation8 + $0x190] sm:$0xff] }
  0x8d   : > { %1571 = vmatpush.bf16.msrb.mxu2 %v2786_v19  ;;  %v2805_v19 = vld [vmem:[#allocation8 + $0x1e8] sm:$0xff] }
  0x8e   : > { %vm1017_vm14 = vcmp.lt.s32.totalorder %v3465_v42, 8 }
  0x8f   : > { %vm3556_vm0 = vmpackc.low %vm1017_vm14, %vm1017_vm14 }
  0x90   : > { %1159 = vmatpush.bf16.msrb.mxu3 %v2760_v44  ;;  %1309 = vmatpush.bf16.msrb.mxu0 %v2768_v45 }
  0x94   : > { %1830 = vmatpush.bf16.msra.mxu0 %v2807_v52 }
  0xf0   : > { %v539_v50 = vpop.f32.mrf.mxu0 }
  0xf1   : > { %v540_v53 = vadd.f32 %v3411_v47, %v539_v50  ;;  %v2799_v50 = vld [vmem:[#allocation8 + $0x1b8] sm:$0xff] }
  0xf2   : > { %1716 = vmatpush.bf16.msra.mxu3 %v2799_v50  ;;  %v1004_v50 = vadd.s32 1, %v623_v11 }
  0xf3   : > { %v3416_v57 = vmax.f32 %v540_v53, 0.0 }
  0xf5   : > { %567 = vst [vmem:[#allocation2 + $0x10] sm:$0xff] %v3416_v57  ;;  %v784_v60 = vpack.c.bf16 %v3416_v57, %v3178_v8  ;;  %v999_v8 = vadd.s32 1, %v588_v49 }
  0xf6   : > { %v549_v62 = vpop.f32.mrf.mxu3 }
  0xf7   : > { %v550_v1 = vadd.f32 %v3411_v47, %v549_v62  ;;  %861 = vmatmul.bf16.vlgmr.msra.gmra.mxu1 %v784_v60  ;;  %vm1015_vm4 = vcmp.lt.s32.totalorder %v999_v8, 8 }
  0xf8   : > { %v541_v3 = vpop.f32.mrf.mxu0  ;;  %vm3447_vm6 = vmpackc.low %vm1015_vm4, %vm1015_vm4 }
  0xf9   : > { %v542_v6 = vadd.f32 %v3411_v47, %v541_v3  ;;  %v3428_v7 = vmax.f32 %v550_v1, 0.0 }
  0xfb   : > { %v3431_v10 = vmax.f32 %v542_v6, 0.0  ;;  %571 = vst [vmem:[#allocation2 + $0x30] sm:$0xff] %v3428_v7 }
  0xfc   : > { %v681_v12 = vld [vmem:[#allocation2 + $0xf] sm:$0xff] }
  0xfd   : > { %568 = vst [vmem:[#allocation2 + $0x18] sm:$0xff] %v3431_v10  ;;  %v689_v17 = vpack.c.bf16 %v681_v12, %v681_v12  ;;  %v983_v18 = vld [vmem:[#allocation2 + $0x9] sm:$0xff]  ;;  %v700_v12 = vadd.s32 4294967295, %v616_v55 }
  0xfe   : > { %v551_v20 = vpop.f32.mrf.mxu3  ;;  %v991_v27 = vpack.c.bf16 %v983_v18, %v983_v18 }
  0xff   : > { %v552_v23 = vadd.f32 %v3411_v47, %v551_v20  ;;  %v753_v24 = vsel %vm3436_vm3, %v689_v17, 0  ;;  %v1205_v48 = vsel %vm3422_vm1, %v689_v17, 0  ;;  %vm708_vm15 = vcmp.ge.s32.totalorder %v700_v12, 0  ;;  %v2797_v12 = vld [vmem:[#allocation8 + $0x1a8] sm:$0xff] }
 0x100   : > { %v544_v25 = vpop.f32.mrf.mxu0  ;;  %v891_v26 = vunpack.c.l.b16 %v753_v24  ;;  %v1055_v41 = vsel %vm3447_vm6, %v991_v27, 0  ;;  %v1238_v0 = vunpack.c.l.b16 %v1205_v48  ;;  %v2778_v24 = vld [vmem:[#allocation8 + $0x110] sm:$0xff]  ;;  %v701_v27 = vadd.s32 4294967295, %v623_v11  ;;  %vm3568_vm2 = vmpackc.low %vm708_vm15, %vm708_vm15  ;;  %v2785_v11 = vld [vmem:[#allocation8 + $0x148] sm:$0xff] }
 0x101   : > { %v545_v29 = vadd.f32 %v3411_v47, %v544_v25  ;;  %v3445_v30 = vmax.f32 %v552_v23, 0.0  ;;  %v1088_v62 = vunpack.c.l.b16 %v1055_v41  ;;  %v2798_v23 = vld [vmem:[#allocation8 + $0x1b0] sm:$0xff]  ;;  %1421 = vmatpush.bf16.msrb.mxu1 %v2778_v24  ;;  %1572 = vmatpush.bf16.msrb.mxu2 %v2785_v11 }
 0x102   : > { %v898_v32 = vpack.c.b16 %v891_v26, %v890_v21  ;;  %v2806_v25 = vld [vmem:[#allocation8 + $0x1f0] sm:$0xff]  ;;  %1717 = vmatpush.bf16.msra.mxu3 %v2798_v23 }
 0x103   : > { %v3454_v36 = vmax.f32 %v545_v29, 0.0  ;;  %572 = vst [vmem:[#allocation2 + $0x38] sm:$0xff] %v3445_v30  ;;  %v3536_v29 = vadd.s32 56, %v3406_v46  ;;  %1831 = vmatpush.bf16.msra.mxu0 %v2806_v25  ;;  %v4030_v8 = vpack.c.bf16 %v3445_v30, %v3428_v7 }
 0x104   : > { %962 = vmatmul.bf16.vlgmr.msra.gmra.mxu2 %v898_v32  ;;  %v1603_v39 = vld [vmem:[#allocation2 + $0x17] sm:$0xff] }
 0x105   : > { %v984_v40 = vld [vmem:[#allocation2 + $0x11] sm:$0xff]  ;;  %569 = vst [vmem:[#allocation2 + $0x20] sm:$0xff] %v3454_v36  ;;  %v3468_v44 = vpack.c.bf16 %v1603_v39, %v1603_v39  ;;  %v3476_v49 = vpack.c.bf16 %v3454_v36, %v3431_v10  ;;  %1422 = vmatpush.bf16.msrb.mxu1 %v2777_v13 }
 0x106   : > { %v3470_v45 = vpack.c.bf16 %v984_v40, %v984_v40  ;;  %v554_v53 = vpop.f32.mrf.mxu3  ;;  %1718 = vmatpush.bf16.msra.mxu3 %v2797_v12 }
 0x107   : > { %v1619_v56 = vsel %vm3422_vm1, %v3468_v44, 0  ;;  %v555_v58 = vadd.f32 %v3411_v47, %v554_v53  ;;  %v1206_v60 = vsel %vm3436_vm3, %v3468_v44, 0  ;;  %866 = vmatmul.bf16.gmra.mxu1 %v3476_v49  ;;  %v754_v21 = vsel %vm3498_vm11, %v3468_v44, 0  ;;  %1832 = vmatpush.bf16.msra.mxu0 %v2805_v19 }
 0x108   : > { %v1056_v59 = vsel %vm3457_vm7, %v3470_v45, 0  ;;  %v546_v61 = vpop.f32.mrf.mxu0  ;;  %v1239_v1 = vunpack.c.l.b16 %v1206_v60  ;;  %v3541_v33 = vunpack.c.l.b16 %v1619_v56  ;;  %v892_v43 = vunpack.c.l.b16 %v754_v21 }
 0x109   : > { %v1089_v63 = vunpack.c.l.b16 %v1056_v59  ;;  %v547_v2 = vadd.f32 %v3411_v47, %v546_v61  ;;  %v3494_v3 = vmax.f32 %v555_v58, 0.0  ;;  %v630_v53 = vand.u32 7, %v3533_v28 }
 0x10a   : > { %v1246_v6 = vpack.c.b16 %v1239_v1, %v1238_v0  ;;  %v1870_v9 = vld [vmem:[#allocation2 + $0x31] sm:$0xff]  ;;  %vm709_vm1 = vcmp.ge.s32.totalorder %v701_v27, 0  ;;  %v637_v56 = vand.u32 7, %v3536_v29 }
 0x10b   : > { %v1096_v5 = vpack.c.b16 %v1089_v63, %v1088_v62  ;;  %v3511_v14 = vmax.f32 %v547_v2, 0.0  ;;  %573 = vst [vmem:[#allocation2 + $0x40] sm:$0xff] %v3494_v3  ;;  %v3520_v16 = vpack.c.bf16 %v1870_v9, %v1870_v9  ;;  %v1194_v40 = vld [vmem:[#allocation2 + $0x37] sm:$0xff]  ;;  %vm3612_vm4 = vmpackc.low %vm709_vm1, %vm709_vm1  ;;  %v3650_v19 = vpack.c.bf16 %v3494_v3, %v3445_v30 }
 0x10c   : > { %v1604_v17 = vld [vmem:[#allocation2 + $0x1f] sm:$0xff]  ;;  %1310 = vmatmul.bf16.vlgmr.msrb.gmra.mxu0 %v1246_v6  ;;  %v3560_v52 = vpack.c.bf16 %v1194_v40, %v1194_v40  ;;  %v3618_v40 = vadd.s32 1, %v630_v53 }
 0x10d   : > { %1160 = vmatmul.bf16.vlgmr.msrb.gmra.mxu3 %v1096_v5  ;;  %v985_v18 = vld [vmem:[#allocation2 + $0x19] sm:$0xff]  ;;  %v3523_v20 = vpack.c.bf16 %v1604_v17, %v1604_v17  ;;  %570 = vst [vmem:[#allocation2 + $0x28] sm:$0xff] %v3511_v14  ;;  %v1886_v22 = vsel %vm3504_vm12, %v3520_v16, 0  ;;  %v3578_v62 = vpack.c.bf16 %v3428_v7, %v3511_v14  ;;  %v1003_v17 = vadd.s32 1, %v616_v55 }
 0x10e   : > { %v556_v26 = vpop.f32.mrf.mxu3  ;;  %v3549_v44 = vpack.c.bf16 %v985_v18, %v985_v18  ;;  %v1623_v63 = vsel %vm3568_vm2, %v3560_v52, 0  ;;  %v3596_v18 = vadd.s32 4294967295, %v630_v53  ;;  %v2776_v55 = vld [vmem:[#allocation8 + $0x100] sm:$0xff]  ;;  %vm1021_vm14 = vcmp.lt.s32.totalorder %v3618_v40, 8 }
 0x10f   : > { %v1620_v32 = vsel %vm3436_vm3, %v3523_v20, 0  ;;  %v557_v34 = vadd.f32 %v3411_v47, %v556_v26  ;;  %v755_v39 = vsel %vm3516_vm13, %v3523_v20, 0  ;;  %v1207_v6 = vsel %vm3498_vm11, %v3523_v20, 0  ;;  %1423 = vmatpush.bf16.msrb.mxu1 %v2776_v55 }
 0x110   : > { %v3547_v41 = vunpack.c.l.b16 %v1620_v32  ;;  %v893_v46 = vunpack.c.l.b16 %v755_v39  ;;  %v1057_v59 = vsel %vm3556_vm0, %v3549_v44, 0  ;;  %vm1020_vm3 = vcmp.lt.s32.totalorder %v1004_v50, 8  ;;  %v2804_v39 = vld [vmem:[#allocation8 + $0x1e0] sm:$0xff] }
 0x111   : > { %v3551_v48 = vmax.f32 %v557_v34, 0.0  ;;  %v1090_v24 = vunpack.c.l.b16 %v1057_v59  ;;  %v1240_v26 = vunpack.c.l.b16 %v1207_v6  ;;  %v3616_v32 = vadd.s32 4294967295, %v637_v56  ;;  %v2796_v34 = vld [vmem:[#allocation8 + $0x1a0] sm:$0xff]  ;;  %vm3622_vm5 = vmpackc.low %vm1020_vm3, %vm1020_vm3  ;;  %1833 = vmatpush.bf16.msra.mxu0 %v2804_v39  ;;  %v2803_v6 = vld [vmem:[#allocation8 + $0x1d8] sm:$0xff] }
 0x112   : > { %v899_v51 = vpack.c.b16 %v893_v46, %v892_v43  ;;  %v687_v13 = vld [vmem:[#allocation2 + $0x3f] sm:$0xff]  ;;  %vm1019_vm8 = vcmp.lt.s32.totalorder %v1003_v17, 8  ;;  %vm710_vm9 = vcmp.ge.s32.totalorder %v3596_v18, 0  ;;  %v1060_v59 = vsel %vm3622_vm5, %v3520_v16, 0  ;;  %1719 = vmatpush.bf16.msra.mxu3 %v2796_v34 }
 0x113   : > { %574 = vst [vmem:[#allocation2 + $0x48] sm:$0xff] %v3551_v48  ;;  %v2784_v50 = vld [vmem:[#allocation8 + $0x140] sm:$0xff]  ;;  %vm711_vm10 = vcmp.ge.s32.totalorder %v3616_v32, 0  ;;  %vm3644_vm15 = vmpackc.low %vm1019_vm8, %vm1019_vm8  ;;  %v1210_v17 = vsel %vm3612_vm4, %v3560_v52, 0  ;;  %v1348_v37 = vpack.c.bf16 %v3511_v14, %v3454_v36  ;;  %v2822_v36 = vld [vmem:[#allocation11 + $0x10] sm:$0xff] }
 0x114   : > { %967 = vmatmul.bf16.gmra.mxu2 %v899_v51  ;;  %v986_v58 = vld [vmem:[#allocation2 + $0x21] sm:$0xff]  ;;  %v1869_v60 = vld [vmem:[#allocation2 + $0x29] sm:$0xff]  ;;  %v3626_v51 = vadd.s32 1, %v637_v56  ;;  %v3638_v56 = vpack.c.bf16 %v687_v13, %v687_v13 }
 0x115   : > { %v1192_v61 = vld [vmem:[#allocation2 + $0x27] sm:$0xff]  ;;  %v3585_v1 = vpack.c.bf16 %v986_v58, %v986_v58  ;;  %v3587_v2 = vpack.c.bf16 %v1869_v60, %v1869_v60  ;;  %v685_v9 = vld [vmem:[#allocation2 + $0x2f] sm:$0xff]  ;;  %v989_v60 = vld [vmem:[#allocation2 + $0x39] sm:$0xff]  ;;  %1573 = vmatpush.bf16.msrb.mxu2 %v2784_v50  ;;  %1834 = vmatpush.bf16.msra.mxu0 %v2803_v6 }
 0x116   : > { %v3589_v5 = vpack.c.bf16 %v1192_v61, %v1192_v61  ;;  %v3608_v35 = vpack.c.bf16 %v685_v9, %v685_v9  ;;  %v2795_v61 = vld [vmem:[#allocation8 + $0x198] sm:$0xff]  ;;  %vm1022_vm1 = vcmp.lt.s32.totalorder %v3626_v51, 8  ;;  %v1624_v13 = vsel %vm3612_vm4, %v3638_v56, 0  ;;  %v2810_v14 = vld [vmem:[#allocation8 + $0x210] sm:$0xff] }
 0x117   : > { %v1058_v21 = vsel %vm3504_vm12, %v3585_v1, 0  ;;  %v1885_v23 = vsel %vm3556_vm0, %v3587_v2, 0  ;;  %871 = vmatmul.bf16.gmra.mxu1 %v3578_v62  ;;  %v1059_v4 = vsel %vm3644_vm15, %v3587_v2, 0  ;;  %1720 = vmatpush.bf16.msra.mxu3 %v2795_v61  ;;  %v3701_v29 = vunpack.c.l.b16 %v1624_v13  ;;  %vm3762_vm3 = vmpackc.low %vm1022_vm1, %vm1022_vm1 }
 0x118   : > { %v1208_v20 = vsel %vm3516_vm13, %v3589_v5, 0  ;;  %v1091_v25 = vunpack.c.l.b16 %v1058_v21  ;;  %v756_v58 = vsel %vm3568_vm2, %v3589_v5, 0  ;;  %v757_v53 = vsel %vm3612_vm4, %v3608_v35, 0 }
 0x119   : > { %v1241_v28 = vunpack.c.l.b16 %v1208_v20  ;;  %v894_v9 = vunpack.c.l.b16 %v756_v58  ;;  %v895_v11 = vunpack.c.l.b16 %v757_v53  ;;  %v3657_v20 = vunpack.c.l.b16 %v1886_v22 }
 0x11a   : > { %v1097_v43 = vpack.c.b16 %v1091_v25, %v1090_v24  ;;  %v1196_v21 = vld [vmem:[#allocation2 + $0x47] sm:$0xff]  ;;  %v1621_v55 = vsel %vm3498_vm11, %v3589_v5, 0  ;;  %v1622_v24 = vsel %vm3516_vm13, %v3608_v35, 0  ;;  %v3668_v25 = vunpack.c.l.b16 %v1060_v59  ;;  %v1610_v39 = vld [vmem:[#allocation2 + $0x4f] sm:$0xff]  ;;  %vm3689_vm11 = vmpackc.low %vm710_vm9, %vm710_vm9 }
 0x11b   : > { %v1247_v46 = vpack.c.b16 %v1241_v28, %v1240_v26  ;;  %v990_v26 = vld [vmem:[#allocation2 + $0x41] sm:$0xff]  ;;  %v3670_v28 = vpack.c.bf16 %v989_v60, %v989_v60  ;;  %v3672_v34 = vunpack.c.l.b16 %v1621_v55  ;;  %v3674_v22 = vunpack.c.l.b16 %v1622_v24  ;;  %v1460_v58 = vld [vmem:[#allocation2 + $0x49] sm:$0xff]  ;;  %vm3714_vm13 = vmpackc.low %vm711_vm10, %vm711_vm10  ;;  %1721 = vmatpush.bf16.msra.mxu3 %v2794_v15 }
 0x11c   : > { %v3681_v5 = vpack.c.bf16 %v1196_v21, %v1196_v21  ;;  %v900_v53 = vpack.c.b16 %v895_v11, %v894_v9  ;;  %v3699_v59 = vunpack.c.l.b16 %v1623_v63  ;;  %v1209_v18 = vsel %vm3568_vm2, %v3608_v35, 0  ;;  %v2827_v11 = vld [vmem:[#allocation11 + $0x38] sm:$0xff]  ;;  %vm3739_vm2 = vmpackc.low %vm1021_vm14, %vm1021_vm14  ;;  %v2824_v63 = vld [vmem:[#allocation11 + $0x20] sm:$0xff] }
 0x11d   : > { %1165 = vmatmul.bf16.gmra.mxu3 %v1097_v43  ;;  %1315 = vmatmul.bf16.gmra.mxu0 %v1247_v46  ;;  %v3676_v43 = vunpack.c.l.b16 %v1885_v23  ;;  %v2802_v46 = vld [vmem:[#allocation8 + $0x1d0] sm:$0xff]  ;;  %v3706_v60 = vpack.c.bf16 %v990_v26, %v990_v26  ;;  %v1618_v61 = vpack.c.bf16 %v1610_v39, %v1610_v39  ;;  %v1243_v9 = vunpack.c.l.b16 %v1210_v17  ;;  %v2793_v26 = vld [vmem:[#allocation8 + $0x188] sm:$0xff]  ;;  %v2815_v39 = vld [vmem:[#allocation8 + $0x238] sm:$0xff] }
 0x11e   : > { %v1625_v6 = vsel %vm3689_vm11, %v3681_v5, 0  ;;  %v3720_v35 = vpack.c.bf16 %v1460_v58, %v1460_v58  ;;  %v1874_v55 = vld [vmem:[#allocation2 + $0x51] sm:$0xff]  ;;  %v1092_v24 = vunpack.c.l.b16 %v1059_v4  ;;  %1835 = vmatpush.bf16.msra.mxu0 %v2802_v46  ;;  %v2801_v17 = vld [vmem:[#allocation8 + $0x1c8] sm:$0xff]  ;;  %v1242_v58 = vunpack.c.l.b16 %v1209_v18  ;;  %2129 = vmatpush.bf16.msra.mxu2 %v2827_v11 }
 0x11f   : > { %v1658_v21 = vunpack.c.l.b16 %v1625_v6  ;;  %v1626_v32 = vsel %vm3714_vm13, %v1618_v61, 0  ;;  %v1884_v4 = vsel %vm3457_vm7, %v3585_v1, 0  ;;  %v1887_v15 = vsel %vm3644_vm15, %v3670_v28, 0  ;;  %2837 = vmatpush.bf16.msra.mxu1 %v2815_v39  ;;  %1722 = vmatpush.bf16.msra.mxu3 %v2793_v26 }
 0x120   : > { %v1659_v6 = vunpack.c.l.b16 %v1626_v32  ;;  %v3745_v61 = vunpack.c.l.b16 %v1884_v4  ;;  %v1888_v32 = vsel %vm3622_vm5, %v3706_v60, 0  ;;  %v3750_v13 = vunpack.c.l.b16 %v1887_v15  ;;  %v2792_v4 = vld [vmem:[#allocation8 + $0x180] sm:$0xff] }
 0x121   : > { %v3754_v0 = vunpack.c.l.b16 %v1888_v32  ;;  %v1882_v40 = vpack.c.bf16 %v1874_v55, %v1874_v55  ;;  %v1889_v50 = vsel %vm3739_vm2, %v3720_v35, 0  ;;  %v2800_v15 = vld [vmem:[#allocation8 + $0x1c0] sm:$0xff]  ;;  %v1098_v55 = vpack.c.b16 %v3668_v25, %v1092_v24  ;;  %v2814_v25 = vld [vmem:[#allocation8 + $0x230] sm:$0xff] }
 0x122   : > { %v3752_v42 = vpack.c.b16 %v1659_v6, %v1658_v21  ;;  %1836 = vmatpush.bf16.msra.mxu0 %v2801_v17  ;;  %v1922_v6 = vunpack.c.l.b16 %v1889_v50  ;;  %v1248_v32 = vpack.c.b16 %v1243_v9, %v1242_v58  ;;  %v758_v26 = vsel %vm3689_vm11, %v3560_v52, 0  ;;  %v2826_v50 = vld [vmem:[#allocation11 + $0x30] sm:$0xff] }
 0x123   : > { %v1926_v38 = vpack.c.b16 %v3754_v0, %v3750_v13  ;;  %v1890_v51 = vsel %vm3762_vm3, %v1882_v40, 0  ;;  %v759_v17 = vsel %vm3714_vm13, %v3638_v56, 0  ;;  %1723 = vmatpush.bf16.msra.mxu3 %v2792_v4  ;;  %v896_v24 = vunpack.c.l.b16 %v758_v26  ;;  %2130 = vmatpush.bf16.msra.mxu2 %v2826_v50 }
 0x124   : > { %972 = vmatmul.bf16.gmra.mxu2 %v900_v53  ;;  %v1883_v53 = vsel %vm3447_vm6, %v3549_v44, 0  ;;  %v1923_v54 = vunpack.c.l.b16 %v1890_v51  ;;  %v897_v58 = vunpack.c.l.b16 %v759_v17  ;;  %2838 = vmatpush.bf16.msra.mxu1 %v2814_v25  ;;  %v1061_v40 = vsel %vm3739_vm2, %v3670_v28, 0  ;;  %v2812_v17 = vld [vmem:[#allocation8 + $0x220] sm:$0xff] }
 0x125   : > { %v3743_v18 = vunpack.c.l.b16 %v1883_v53  ;;  %v1212_v4 = vsel %vm3714_vm13, %v3681_v5, 0  ;;  %v1470_v5 = vsel %vm3457_vm7, %v3549_v44, 0  ;;  %v1471_v31 = vsel %vm3556_vm0, %v3585_v1, 0  ;;  %v2821_v1 = vld [vmem:[#allocation11 + $0x8] sm:$0xff] }
 0x126   : > { %1837 = vmatpush.bf16.msra.mxu0 %v2800_v15  ;;  %v3779_v9 = vpack.c.b16 %v1923_v54, %v1922_v6  ;;  %v901_v52 = vpack.c.b16 %v897_v58, %v896_v24  ;;  %v1211_v54 = vsel %vm3689_vm11, %v3638_v56, 0  ;;  %v1347_v15 = vpack.c.bf16 %v3431_v10, %v3416_v57  ;;  %v2823_v24 = vld [vmem:[#allocation11 + $0x18] sm:$0xff] }
 0x127   : > { %876 = vmatmul.bf16.gmra.mxu1 %v3650_v19  ;;  %v1924_v21 = vpack.c.b16 %v3745_v61, %v3743_v18  ;;  %2845 = vmatpush.bf16.msrb.mxu3 %v2827_v11  ;;  %v2825_v11 = vld [vmem:[#allocation11 + $0x28] sm:$0xff]  ;;  %v1094_v6 = vunpack.c.l.b16 %v1061_v40  ;;  %v1244_v51 = vunpack.c.l.b16 %v1211_v54  ;;  %v1245_v26 = vunpack.c.l.b16 %v1212_v4  ;;  %v2811_v58 = vld [vmem:[#allocation8 + $0x218] sm:$0xff]  ;;  %v2820_v54 = vld [vmem:[#allocation11] sm:$0xff] }
 0x128   : > { %2131 = vmatpush.bf16.msra.mxu2 %v2825_v11  ;;  %v1469_v57 = vsel %vm3447_vm6, %v3470_v45, 0  ;;  %v1503_v10 = vunpack.c.l.b16 %v1470_v5  ;;  %v1472_v45 = vsel %vm3504_vm12, %v3587_v2, 0  ;;  %v4029_v44 = vpack.c.b16 %v3547_v41, %v3541_v33  ;;  %v2808_v2 = vld [vmem:[#allocation8 + $0x200] sm:$0xff] }
 0x129   : > { %v1249_v23 = vpack.c.b16 %v1245_v26, %v1244_v51  ;;  %v1505_v40 = vunpack.c.l.b16 %v1472_v45  ;;  %v1474_v33 = vsel %vm3622_vm5, %v3670_v28, 0  ;;  %v4031_v41 = vpack.c.b16 %v3674_v22, %v3672_v34 }
 0x12a   : > { %1980 = vmatpush.bf16.msrb.mxu0 %v2815_v39  ;;  %v2813_v39 = vld [vmem:[#allocation8 + $0x228] sm:$0xff]  ;;  %v1507_v30 = vunpack.c.l.b16 %v1474_v33  ;;  %v1475_v27 = vsel %vm3739_vm2, %v3706_v60, 0  ;;  %v4033_v28 = vpack.c.b16 %v3701_v29, %v3699_v59  ;;  %v4034_v46 = vpack.c.b16 %v3657_v20, %v3676_v43  ;;  %v2816_v59 = vld [vmem:[%s3388_s21] sm:$0xff] }
 0x12b   : > { %2846 = vmatpush.bf16.msrb.mxu3 %v2826_v50  ;;  %2839 = vmatpush.bf16.msra.mxu1 %v2813_v39  ;;  %v1502_v50 = vunpack.c.l.b16 %v1469_v57  ;;  %v1508_v34 = vunpack.c.l.b16 %v1475_v27  ;;  %v2818_v57 = vld [vmem:[%s3388_s21 + $0x10] sm:$0xff] }
 0x12c   : > { %2132 = vmatpush.bf16.msra.mxu2 %v2824_v63 }
 0x12d   : > { %1170 = vmatmul.bf16.gmra.mxu3 %v1098_v55  ;;  %1320 = vmatmul.bf16.gmra.mxu0 %v1248_v32  ;;  %v1062_v55 = vsel %vm3762_vm3, %v3706_v60, 0  ;;  %v1764_v60 = vpack.c.bf16 0.0, %v3551_v48 }
 0x12e   : > { %1981 = vmatpush.bf16.msrb.mxu0 %v2814_v25  ;;  %v1095_v32 = vunpack.c.l.b16 %v1062_v55  ;;  %v1510_v25 = vpack.c.b16 %v1503_v10, %v1502_v50  ;;  %v2809_v55 = vld [vmem:[#allocation8 + $0x208] sm:$0xff] }
 0x12f   : > { %2847 = vmatpush.bf16.msrb.mxu3 %v2825_v11  ;;  %2840 = vmatpush.bf16.msra.mxu1 %v2812_v17  ;;  %v2819_v11 = vld [vmem:[%s3388_s21 + $0x18] sm:$0xff] }
 0x130   : > { %v1099_v56 = vpack.c.b16 %v1095_v32, %v1094_v6  ;;  %2133 = vmatpush.bf16.msra.mxu2 %v2823_v24  ;;  %v2817_v6 = vld [vmem:[%s3388_s21 + $0x8] sm:$0xff] }
 0x132   : > { %1982 = vmatpush.bf16.msrb.mxu0 %v2813_v39 }
 0x133   : > { %2848 = vmatpush.bf16.msrb.mxu3 %v2824_v63  ;;  %2841 = vmatpush.bf16.msra.mxu1 %v2811_v58 }
 0x134   : > { %977 = vmatmul.bf16.gmra.mxu2 %v901_v52  ;;  %v1504_v52 = vunpack.c.l.b16 %v1471_v31 }
 0x135   : > { %2134 = vmatpush.bf16.msra.mxu2 %v2822_v36 }
 0x136   : > { %1983 = vmatpush.bf16.msrb.mxu0 %v2812_v17  ;;  %v1511_v47 = vpack.c.b16 %v1505_v40, %v1504_v52 }
 0x137   : > { %1424 = vmatmul.bf16.vlgmr.msrb.gmra.mxu1 %v1347_v15  ;;  %2849 = vmatpush.bf16.msrb.mxu3 %v2823_v24 }
 0x138   : > { %2842 = vmatpush.bf16.msra.mxu1 %v2810_v14 }
 0x139   : > { %2135 = vmatpush.bf16.msra.mxu2 %v2821_v1 }
 0x13a   : > { %1984 = vmatpush.bf16.msrb.mxu0 %v2811_v58 }
 0x13b   : > { %2850 = vmatpush.bf16.msrb.mxu3 %v2822_v36 }
 0x13c   : > { %2843 = vmatpush.bf16.msra.mxu1 %v2809_v55 }
 0x13d   : > { %1175 = vmatmul.bf16.gmra.mxu3 %v1099_v56  ;;  %1325 = vmatmul.bf16.gmra.mxu0 %v1249_v23 }
 0x13e   : > { %1985 = vmatpush.bf16.msrb.mxu0 %v2810_v14  ;;  %2136 = vmatpush.bf16.msra.mxu2 %v2820_v54 }
 0x13f   : > { %2851 = vmatpush.bf16.msrb.mxu3 %v2821_v1 }
 0x140   : > { %2844 = vmatpush.bf16.msra.mxu1 %v2808_v2 }
 0x142   : > { %1986 = vmatpush.bf16.msrb.mxu0 %v2809_v55 }
 0x143   : > { %2852 = vmatpush.bf16.msrb.mxu3 %v2820_v54 }
 0x144   : > { %1574 = vmatmul.bf16.vlgmr.msrb.gmra.mxu2 %v1510_v25 }
 0x146   : > { %1987 = vmatpush.bf16.msrb.mxu0 %v2808_v2 }
 0x147   : > { %1429 = vmatmul.bf16.gmra.mxu1 %v1348_v37 }
 0x14d   : > { %1724 = vmatmul.bf16.vlgmr.msra.gmra.mxu3 %v4029_v44  ;;  %1838 = vmatmul.bf16.vlgmr.msra.gmra.mxu0 %v3476_v49  ;;  %v1473_v49 = vsel %vm3644_vm15, %v3520_v16, 0  ;;  %v4032_v16 = vpack.c.bf16 %v3551_v48, %v3494_v3 }
 0x14e   : > { %v1506_v7 = vunpack.c.l.b16 %v1473_v49 }
 0x150   : > { %v1512_v12 = vpack.c.b16 %v1507_v30, %v1506_v7 }
 0x154   : > { %1579 = vmatmul.bf16.gmra.mxu2 %v1511_v47 }
 0x157   : > { %1434 = vmatmul.bf16.gmra.mxu1 %v4030_v8 }
 0x15d   : > { %1729 = vmatmul.bf16.gmra.mxu3 %v4031_v41  ;;  %1843 = vmatmul.bf16.gmra.mxu0 %v3578_v62  ;;  %v1476_v62 = vsel %vm3762_vm3, %v3720_v35, 0 }
 0x15e   : > { %v1509_v22 = vunpack.c.l.b16 %v1476_v62 }
 0x160   : > { %v1513_v3 = vpack.c.b16 %v1509_v22, %v1508_v34 }
 0x164   : > { %1584 = vmatmul.bf16.gmra.mxu2 %v1512_v12 }
 0x167   : > { %1439 = vmatmul.bf16.gmra.mxu1 %v4032_v16 }
 0x16d   : > { %1734 = vmatmul.bf16.gmra.mxu3 %v4033_v28  ;;  %1848 = vmatmul.bf16.gmra.mxu0 %v3650_v19 }
 0x174   : > { %1589 = vmatmul.bf16.gmra.mxu2 %v1513_v3  ;;  %v862_v4 = vpop.f32.mrf.mxu1 }
 0x177   : > { %1993 = vmatmul.bf16.vlgmr.msra.gmra.mxu1 %v4034_v46 }
 0x17c   : > { %v864_v35 = vpop.f32.mrf.mxu1 }
 0x17d   : > { %1739 = vmatmul.bf16.gmra.mxu3 %v3752_v42  ;;  %1853 = vmatmul.bf16.gmra.mxu0 %v1764_v60 }
 0x184   : > { %2137 = vmatmul.bf16.vlgmr.msra.gmra.mxu2 %v2816_v59  ;;  %v867_v19 = vpop.f32.mrf.mxu1 }
 0x187   : > { %v963_v29 = vpop.f32.mrf.mxu2  ;;  %1998 = vmatmul.bf16.gmra.mxu1 %v1926_v38 }
 0x188   : > { %v964_v53 = vadd.f32 %v963_v29, %v862_v4 }
 0x189   : > { %v1311_v39 = vpop.f32.mrf.mxu0 }
 0x18c   : > { %v869_v48 = vpop.f32.mrf.mxu1 }
 0x18d   : > { %1988 = vmatmul.bf16.vlgmr.msrb.gmra.mxu0 %v1924_v21  ;;  %2152 = vmatmul.bf16.vlgmr.msrb.gmra.mxu3 %v2819_v11 }
 0x18f   : > { %v965_v20 = vpop.f32.mrf.mxu2 }
 0x190   : > { %v1161_v43 = vpop.f32.mrf.mxu3  ;;  %v966_v42 = vadd.f32 %v965_v20, %v864_v35 }
 0x191   : > { %v1181_v15 = vadd.f32 %v1161_v43, %v964_v53  ;;  %v1313_v32 = vpop.f32.mrf.mxu0 }
 0x193   : > { %v1331_v51 = vadd.f32 %v1311_v39, %v1181_v15 }
 0x194   : > { %2142 = vmatmul.bf16.gmra.mxu2 %v2817_v6  ;;  %v872_v0 = vpop.f32.mrf.mxu1 }
 0x197   : > { %v968_v38 = vpop.f32.mrf.mxu2  ;;  %2003 = vmatmul.bf16.gmra.mxu1 %v3779_v9 }
 0x198   : > { %v1163_v13 = vpop.f32.mrf.mxu3  ;;  %v969_v26 = vadd.f32 %v968_v38, %v867_v19 }
 0x199   : > { %v1182_v56 = vadd.f32 %v1163_v13, %v966_v42 }
 0x19a   : > { %v1316_v18 = vpop.f32.mrf.mxu0 }
 0x19b   : > { %v1332_v61 = vadd.f32 %v1313_v32, %v1182_v56 }
 0x19c   : > { %v874_v21 = vpop.f32.mrf.mxu1 }
 0x19f   : > { %v970_v23 = vpop.f32.mrf.mxu2 }
 0x1a0   : > { %v1166_v5 = vpop.f32.mrf.mxu3  ;;  %v971_v63 = vadd.f32 %v970_v23, %v869_v48 }
 0x1a1   : > { %v1183_v17 = vadd.f32 %v1166_v5, %v969_v26 }
 0x1a2   : > { %v1318_v10 = vpop.f32.mrf.mxu0 }
 0x1a3   : > { %v1333_v50 = vadd.f32 %v1316_v18, %v1183_v17 }
 0x1a4   : > { %2147 = vmatmul.bf16.gmra.mxu2 %v2818_v57  ;;  %v877_v25 = vpop.f32.mrf.mxu1 }
 0x1a7   : > { %v973_v24 = vpop.f32.mrf.mxu2 }
 0x1a8   : > { %v1168_v58 = vpop.f32.mrf.mxu3  ;;  %v974_v37 = vadd.f32 %v973_v24, %v872_v0 }
 0x1a9   : > { %v1184_v31 = vadd.f32 %v1168_v58, %v971_v63 }
 0x1aa   : > { %v1321_v45 = vpop.f32.mrf.mxu0 }
 0x1ab   : > { %v1334_v9 = vadd.f32 %v1318_v10, %v1184_v31 }
 0x1ac   : > { %v879_v44 = vpop.f32.mrf.mxu1 }
 0x1af   : > { %v975_v36 = vpop.f32.mrf.mxu2 }
 0x1b0   : > { %v1171_v14 = vpop.f32.mrf.mxu3  ;;  %v976_v52 = vadd.f32 %v975_v36, %v874_v21 }
 0x1b1   : > { %v1185_v40 = vadd.f32 %v1171_v14, %v974_v37  ;;  %v3882_v14 = vld [vmem:[%s3972_s7] ss:$0 sm:$0xff] }
 0x1b2   : > { %v1323_v47 = vpop.f32.mrf.mxu0 }
 0x1b3   : > { %v1335_v1 = vadd.f32 %v1321_v45, %v1185_v40 }
 0x1b4   : > { %v1425_v55 = vpop.f32.mrf.mxu1 }
 0x1b5   : > { %v1445_v8 = vadd.f32 %v1425_v55, %v1331_v51 }
 0x1b7   : > { %v978_v49 = vpop.f32.mrf.mxu2 }
 0x1b8   : > { %v1173_v33 = vpop.f32.mrf.mxu3  ;;  %v979_v41 = vadd.f32 %v978_v49, %v877_v25 }
 0x1b9   : > { %v1186_v2 = vadd.f32 %v1173_v33, %v976_v52 }
 0x1ba   : > { %v1326_v54 = vpop.f32.mrf.mxu0 }
 0x1bb   : > { %v1336_v7 = vadd.f32 %v1323_v47, %v1186_v2 }
 0x1bc   : > { %v1427_v30 = vpop.f32.mrf.mxu1 }
 0x1bd   : > { %v1446_v12 = vadd.f32 %v1427_v30, %v1332_v61 }
 0x1bf   : > { %v980_v16 = vpop.f32.mrf.mxu2 }
 0x1c0   : > { %v1176_v27 = vpop.f32.mrf.mxu3  ;;  %v981_v62 = vadd.f32 %v980_v16, %v879_v44 }
 0x1c1   : > { %v1187_v28 = vadd.f32 %v1176_v27, %v979_v41 }
 0x1c2   : > { %v1328_v34 = vpop.f32.mrf.mxu0 }
 0x1c3   : > { %v1337_v22 = vadd.f32 %v1326_v54, %v1187_v28 }
 0x1c4   : > { %v1430_v3 = vpop.f32.mrf.mxu1 }
 0x1c5   : > { %v1447_v4 = vadd.f32 %v1430_v3, %v1333_v50 }
 0x1c7   : > { %v1575_v60 = vpop.f32.mrf.mxu2 }
 0x1c8   : > { %v1178_v46 = vpop.f32.mrf.mxu3  ;;  %v1595_v31 = vadd.f32 %v1575_v60, %v1445_v8 }
 0x1c9   : > { %v1188_v35 = vadd.f32 %v1178_v46, %v981_v62 }
 0x1ca   : > { %v1839_v59 = vpop.f32.mrf.mxu0 }
 0x1cb   : > { %v3855_v19 = vadd.f32 %v1328_v34, %v1188_v35 }
 0x1cc   : > { %v1432_v29 = vpop.f32.mrf.mxu1 }
 0x1cd   : > { %v3857_v53 = vadd.f32 %v1432_v29, %v1334_v9 }
 0x1cf   : > { %v1577_v11 = vpop.f32.mrf.mxu2 }
 0x1d0   : > { %v1725_v39 = vpop.f32.mrf.mxu3  ;;  %v1596_v47 = vadd.f32 %v1577_v11, %v1446_v12 }
 0x1d1   : > { %v1745_v45 = vadd.f32 %v1725_v39, %v1595_v31 }
 0x1d2   : > { %v1841_v48 = vpop.f32.mrf.mxu0 }
 0x1d3   : > { %v1859_v52 = vadd.f32 %v1839_v59, %v1745_v45 }
 0x1d4   : > { %v1435_v20 = vpop.f32.mrf.mxu1 }
 0x1d5   : > { %v3859_v43 = vadd.f32 %v1435_v20, %v1335_v1  ;;  %v3887_v1 = vld [vmem:[%s3969_s4] ss:$0 sm:$0xff] }
 0x1d7   : > { %v1580_v42 = vpop.f32.mrf.mxu2 }
 0x1d8   : > { %v1727_v15 = vpop.f32.mrf.mxu3  ;;  %v1597_v49 = vadd.f32 %v1580_v42, %v1447_v4 }
 0x1d9   : > { %v1746_v33 = vadd.f32 %v1727_v15, %v1596_v47 }
 0x1da   : > { %v1844_v6 = vpop.f32.mrf.mxu0 }
 0x1db   : > { %v1860_v28 = vadd.f32 %v1841_v48, %v1746_v33 }
 0x1dc   : > { %v1437_v32 = vpop.f32.mrf.mxu1 }
 0x1dd   : > { %v3861_v51 = vadd.f32 %v1437_v32, %v1336_v7 }
 0x1df   : > { %v1582_v0 = vpop.f32.mrf.mxu2 }
 0x1e0   : > { %v1730_v38 = vpop.f32.mrf.mxu3  ;;  %v1598_v35 = vadd.f32 %v1582_v0, %v3857_v53 }
 0x1e1   : > { %v1747_v30 = vadd.f32 %v1730_v38, %v1597_v49 }
 0x1e2   : > { %v3863_v13 = vpop.f32.mrf.mxu0 }
 0x1e3   : > { %v1861_v46 = vadd.f32 %v1844_v6, %v1747_v30 }
 0x1e4   : > { %v1440_v26 = vpop.f32.mrf.mxu1 }
 0x1e5   : > { %v1451_v8 = vadd.f32 %v1440_v26, %v1337_v22 }
 0x1e7   : > { %v3865_v56 = vpop.f32.mrf.mxu2 }
 0x1e8   : > { %v1732_v18 = vpop.f32.mrf.mxu3 }
 0x1e9   : > { %v1748_v15 = vadd.f32 %v1732_v18, %v1598_v35 }
 0x1ea   : > { %v3867_v61 = vpop.f32.mrf.mxu0 }
 0x1ec   : > { %v1442_v21 = vpop.f32.mrf.mxu1 }
 0x1ed   : > { %v1452_v4 = vadd.f32 %v1442_v21, %v3855_v19 }
 0x1ef   : > { %v3869_v23 = vpop.f32.mrf.mxu2 }
 0x1f0   : > { %v3871_v5 = vpop.f32.mrf.mxu3  ;;  %v1600_v49 = vadd.f32 %v3869_v23, %v3861_v51 }
 0x1f2   : > { %v3873_v63 = vpop.f32.mrf.mxu0 }
 0x1f4   : > { %v1994_v17 = vpop.f32.mrf.mxu1 }
 0x1f5   : > { %v2011_v59 = vadd.f32 %v1994_v17, %v1861_v46  ;;  %v1862_v17 = vadd.f32 %v3863_v13, %v1748_v15 }
 0x1f7   : > { %v1590_v57 = vpop.f32.mrf.mxu2  ;;  %v2023_v53 = vadd.f32 %v3887_v1, %v2011_v59 }
 0x1f8   : > { %v3875_v10 = vpop.f32.mrf.mxu3  ;;  %v1601_v7 = vadd.f32 %v1590_v57, %v1451_v8 }
 0x1fa   : > { %v1854_v50 = vpop.f32.mrf.mxu0 }
 0x1fc   : > { %v1996_v25 = vpop.f32.mrf.mxu1 }
 0x1fd   : > { %v2012_v31 = vadd.f32 %v1996_v25, %v1862_v17 }
 0x1ff   : > { %v1592_v24 = vpop.f32.mrf.mxu2 }
 0x200   : > { %v1740_v58 = vpop.f32.mrf.mxu3  ;;  %v1602_v48 = vadd.f32 %v1592_v24, %v1452_v4 }
 0x201   : > { %v1751_v12 = vadd.f32 %v1740_v58, %v1601_v7  ;;  %v1599_v58 = vadd.f32 %v3865_v56, %v3859_v43 }
 0x202   : > { %v1856_v37 = vpop.f32.mrf.mxu0 }
 0x203   : > { %v1865_v60 = vadd.f32 %v1854_v50, %v1751_v12 }
 0x204   : > { %v3877_v9 = vpop.f32.mrf.mxu1 }
 0x207   : > { %v2138_v44 = vpop.f32.mrf.mxu2 }
 0x208   : > { %v1742_v36 = vpop.f32.mrf.mxu3  ;;  %v2139_v41 = vadd.f32 %v3882_v14, %v2138_v44 }
 0x209   : > { %v1752_v32 = vadd.f32 %v1742_v36, %v1602_v48 }
 0x20a   : > { %v1989_v40 = vpop.f32.mrf.mxu0 }
 0x20b   : > { %v2009_v55 = vadd.f32 %v1989_v40, %v1859_v52  ;;  %v1866_v18 = vadd.f32 %v1856_v37, %v1752_v32  ;;  %v1749_v40 = vadd.f32 %v3871_v5, %v1599_v58  ;;  %v2024_v37 = vadd.f32 %v3887_v1, %v2012_v31 }
 0x20c   : > { %v3892_v54 = vpop.f32.mrf.mxu1 }
 0x20d   : > { %v2021_v2 = vadd.f32 %v3887_v1, %v2009_v55  ;;  %v1863_v56 = vadd.f32 %v3867_v61, %v1749_v40 }
 0x20f   : > { %v2158_v16 = vadd.f32 %v2139_v41, %v2021_v2  ;;  %v2140_v27 = vpop.f32.mrf.mxu2  ;;  %v2013_v5 = vadd.f32 %v3877_v9, %v1863_v56  ;;  %v1750_v41 = vadd.f32 %v3875_v10, %v1600_v49 }
 0x210   : > { %v2153_v34 = vpop.f32.mrf.mxu3  ;;  %v2141_v29 = vadd.f32 %v3882_v14, %v2140_v27 }
 0x211   : > { %v2166_v62 = vmax.f32 %v2158_v16, 0.0  ;;  %v2154_v42 = vadd.f32 %v3882_v14, %v2153_v34  ;;  %v2025_v7 = vadd.f32 %v3887_v1, %v2013_v5  ;;  %v1864_v61 = vadd.f32 %v3873_v63, %v1750_v41 }
 0x212   : > { %v1991_v3 = vpop.f32.mrf.mxu0 }
 0x213   : > { %2174 = vst [vmem:[%s3894_s15] sm:$0xff] %v2166_v62  ;;  %v2010_v22 = vadd.f32 %v1991_v3, %v1860_v28  ;;  %v2014_v51 = vadd.f32 %v3892_v54, %v1864_v61 }
 0x214   : > { %v2004_v39 = vpop.f32.mrf.mxu1 }
 0x215   : > { %v2022_v11 = vadd.f32 %v3887_v1, %v2010_v22  ;;  %v2015_v20 = vadd.f32 %v2004_v39, %v1865_v60  ;;  %v2026_v9 = vadd.f32 %v3887_v1, %v2014_v51 }
 0x217   : > { %v2159_v6 = vadd.f32 %v2141_v29, %v2022_v11  ;;  %v2143_v38 = vpop.f32.mrf.mxu2  ;;  %v2027_v19 = vadd.f32 %v3887_v1, %v2015_v20 }
 0x218   : > { %v2144_v26 = vadd.f32 %v3882_v14, %v2143_v38  ;;  %v2155_v50 = vpop.f32.mrf.mxu3 }
 0x219   : > { %v2167_v0 = vmax.f32 %v2159_v6, 0.0  ;;  %v2164_v21 = vadd.f32 %v2154_v42, %v2027_v19  ;;  %v2156_v52 = vadd.f32 %v3882_v14, %v2155_v50 }
 0x21a   : > { %v2160_v57 = vadd.f32 %v2144_v26, %v2023_v53 }
 0x21b   : > { %2175 = vst [vmem:[%s3894_s15 + $0x8] sm:$0xff] %v2167_v0  ;;  %v2172_v24 = vmax.f32 %v2164_v21, 0.0 }
 0x21c   : > { %v2168_v45 = vmax.f32 %v2160_v57, 0.0  ;;  %v2006_v44 = vpop.f32.mrf.mxu1 }
 0x21d   : > { %2180 = vst [vmem:[%s3894_s15 + $0x30] sm:$0xff] %v2172_v24  ;;  %v2016_v36 = vadd.f32 %v2006_v44, %v1866_v18 }
 0x21e   : > { %2176 = vst [vmem:[%s3894_s15 + $0x10] sm:$0xff] %v2168_v45 }
 0x21f   : > { %v2145_v13 = vpop.f32.mrf.mxu2  ;;  %v2028_v47 = vadd.f32 %v3887_v1, %v2016_v36 }
 0x220   : > { %v2146_v55 = vadd.f32 %v3882_v14, %v2145_v13 }
 0x221   : > { %v2165_v43 = vadd.f32 %v2156_v52, %v2028_v47 }
 0x222   : > { %v2161_v25 = vadd.f32 %v2146_v55, %v2024_v37 }
 0x223   : > { %v2173_v8 = vmax.f32 %v2165_v43, 0.0 }
 0x224   : > { %v2169_v33 = vmax.f32 %v2161_v25, 0.0 }
 0x225   : > { %2181 = vst [vmem:[%s3894_s15 + $0x38] sm:$0xff] %v2173_v8 }
 0x226   : > { %2177 = vst [vmem:[%s3894_s15 + $0x18] sm:$0xff] %v2169_v33 }
 0x227   : > { %v2148_v2 = vpop.f32.mrf.mxu2 }
 0x228   : > { %v2149_v30 = vadd.f32 %v3882_v14, %v2148_v2 }
 0x22a   : > { %v2162_v16 = vadd.f32 %v2149_v30, %v2025_v7 }
 0x22c   : > { %v2170_v23 = vmax.f32 %v2162_v16, 0.0 }
 0x22e   : > { %2178 = vst [vmem:[%s3894_s15 + $0x20] sm:$0xff] %v2170_v23 }
 0x22f   : > { %v2150_v10 = vpop.f32.mrf.mxu2 }
 0x230   : > { %v2151_v12 = vadd.f32 %v3882_v14, %v2150_v10 }
 0x232   : > { %v2163_v63 = vadd.f32 %v2151_v12, %v2026_v9 }
 0x234   : > { %v2171_v27 = vmax.f32 %v2163_v63, 0.0 }
 0x236   : > { %2179 = vst [vmem:[%s3894_s15 + $0x28] sm:$0xff] %v2171_v27 }
 0x237   : > { %3120 = shalt.err (!%p3117_p11)
}
 0x238   : > { %s3179_s23 = smov 128   ;;  %s3180_s6 = smov 8  }
 0x239   : > { %2869 = dma.vmem_to_hbm [thread:$0]  (%p3318_p7), %s2196_s0, 1024, %s2198_s17, %s2183_s9, %s3179_s23, %s3179_s23, %s3180_s6  }
 0x23a PF: > { %s2212_s29 = sand.u32 1, %s3159_s27   ;;  %p4035_p12 = scmp.ge.s32.totalorder %s3171_s30, 2 }
 0x23b   : > { %s2213_s19 = scalar_lea.sflag [#allocation5], %s2212_s29 }
 0x23c   : > { %p2889_p13 = pnand %p4035_p12, %p3261_p6 }
 0x23e   : > { %p2890_p0 = pneg %p2889_p13 }
 0x240   : > { %3154 = dma.done.wait (%p2890_p0), %s2213_s19, 1024  }
 0x241   : > { %3156 = vsyncadd (%p2890_p0), %s2213_s19, 4294966272  ;;  %s4036_s1 = sld [smem:[#allocation18_spill]]  ;;  %p25_p3 = scmp.ge.s32.totalorder %s3299_s18, 4  }
 0x242   : > { %s4037_s29 = sld [smem:[#allocation19_spill]]  ;;  %s4038_s27 = smov %s3163_s28 }
 0x243   : > { %s4040_s30 = smov %s3299_s18  ;;  %27 = sbr.rel (!%p25_p3) target bundleno = 13 (0xd), region = 130 }
 0x247   : > { %s4039_s28 = smov %s4036_s1 }
 0x248   :  { %2219 = vsyncpa [#allocation4], 1 }
 0x249   :  { %2221 = vsyncpa [#allocation4 + $0x1], 1 }
 0x24a   :  { %2222 = vsyncpa [#allocation7], 1 }
 0x24b   :  { %2223 = vsyncpa [#allocation10], 1 }
 0x24c   :  { %2225 = vsyncpa [#allocation10 + $0x1], 1 }
 0x24d   :  { %2226 = vsyncpa [#allocation5], 1 }
 0x24e   :  { %2228 = vsyncpa [#allocation5 + $0x1], 1 }

</bundles_post_ra>
